<compile_context>
chip_gen: v5e
topology: v5e:2x2
jax: 0.10.0
libtpu: 0.0.40
codegen_flags: <defaults>
</compile_context>

<pallas_src>
import functools
import math

import jax
import jax.numpy as jnp
from jax.experimental import pallas as pl
from jax.experimental.pallas import tpu as pltpu


# ------------------------------ model config -------------------------------
VOCAB = 100
HIDDEN = 32
N_HEADS = 4
HEAD_DIM = HIDDEN // N_HEADS
N_LAYERS = 2
FFN = 64
MAX_POS = 16
N_TYPES = 2
N_CLASSES = 2
LANE = 128          # classifier output padded to a lane-dense slab
LN_EPS = 1e-12


# ----------------------------- fused Pallas kernel ---------------------------

def _layernorm(x, g, b, eps=LN_EPS):
    mu = jnp.mean(x, axis=-1, keepdims=True)
    var = jnp.mean(jnp.square(x - mu), axis=-1, keepdims=True)
    return (x - mu) * jax.lax.rsqrt(var + eps) * g + b


def _bert_fused_kernel(ids_ref, wemb_ref, ptemb_ref, eg_ref, eb_ref,
                       wq_ref, bq_ref, wk_ref, bk_ref, wv_ref, bv_ref,
                       wo_ref, bo_ref, ln1g_ref, ln1b_ref,
                       w1_ref, b1_ref, w2_ref, b2_ref, ln2g_ref, ln2b_ref,
                       poolw_ref, poolb_ref, clsw_ref, clsb_ref,
                       logits_ref, *, n_layers, n_heads):
    vocab, hidden = wemb_ref.shape
    head_dim = wq_ref.shape[-1]
    scale = 1.0 / math.sqrt(head_dim)

    # --- embedding: in-kernel one-hot gather + position/type bias + LN -------
    ids = ids_ref[0]                                            # (S, 1) int32
    seq = ids.shape[0]
    one_hot = (ids == jax.lax.broadcasted_iota(jnp.int32, (seq, vocab), 1)
               ).astype(jnp.float32)                            # (S, V)
    emb = (jnp.dot(one_hot, wemb_ref[...],
                   preferred_element_type=jnp.float32) + ptemb_ref[...])
    h = _layernorm(emb, eg_ref[...], eb_ref[...])               # (S, H)

    # --- encoder layers: all weights VMEM-resident at this toy size ----------
    for l in range(n_layers):
        # heads-batched projections (no lane slicing of a fused qkv)
        hb = jnp.broadcast_to(h, (n_heads, seq, hidden))        # (n, S, H)
        q = jnp.einsum('nsk,nkd->nsd', hb, wq_ref[l],
                       preferred_element_type=jnp.float32) + bq_ref[l]
        k = jnp.einsum('nsk,nkd->nsd', hb, wk_ref[l],
                       preferred_element_type=jnp.float32) + bk_ref[l]
        v = jnp.einsum('nsk,nkd->nsd', hb, wv_ref[l],
                       preferred_element_type=jnp.float32) + bv_ref[l]

        # per-batch (S, S) scores -> no block-diagonal mask needed
        s = jnp.einsum('nqd,nkd->nqk', q, k,
                       preferred_element_type=jnp.float32) * scale
        m = jnp.max(s, axis=-1, keepdims=True)
        p = jnp.exp(s - m)
        p = p / jnp.sum(p, axis=-1, keepdims=True)              # exact softmax
        pv = jnp.einsum('nqk,nkd->nqd', p, v,
                        preferred_element_type=jnp.float32)     # (n, S, dh)

        # output projection folded per head and reduced over heads
        # (mathematically == concat(heads) @ Wo; avoids any in-kernel
        #  sublane transpose / lane reshape of the per-head results)
        attn = jnp.sum(jnp.einsum('nqd,ndm->nqm', pv, wo_ref[l],
                                  preferred_element_type=jnp.float32),
                       axis=0) + bo_ref[l]                      # (S, H)

        # residual + LN fused right here (no HBM writeback)
        h = _layernorm(h + attn, ln1g_ref[l], ln1b_ref[l])

        # FFN with gelu(tanh) on the EUP, then residual + LN
        ff = (jnp.dot(h, w1_ref[l], preferred_element_type=jnp.float32)
              + b1_ref[l])
        ff = jax.nn.gelu(ff, approximate=True)
        ff = (jnp.dot(ff, w2_ref[l], preferred_element_type=jnp.float32)
              + b2_ref[l])
        h = _layernorm(h + ff, ln2g_ref[l], ln2b_ref[l])

    # --- pooler: [CLS] is row 0 of this batch element's block, then tanh -----
    cls_vec = h[0:1, :]                                         # (1, H)
    pooled = jnp.tanh(jnp.dot(cls_vec, poolw_ref[...],
                              preferred_element_type=jnp.float32)
                      + poolb_ref[...])

    # --- classifier into a lane-dense (1, 128) slab ---------------------------
    logits_ref[0] = (jnp.dot(pooled, clsw_ref[...],
                             preferred_element_type=jnp.float32)
                     + clsb_ref[...]).astype(logits_ref.dtype)


# ------------------------------ params --------------------------------------

def init_params(key):
    keys = iter(jax.random.split(key, 64))

    def w(shape):
        return (0.02 * jax.random.normal(next(keys), shape)).astype(jnp.float32)

    return {
        "word_emb": w((VOCAB, HIDDEN)),
        "pos_emb": w((MAX_POS, HIDDEN)),
        "type_emb": w((N_TYPES, HIDDEN)),
        "emb_ln_g": jnp.ones((HIDDEN,), jnp.float32),
        "emb_ln_b": jnp.zeros((HIDDEN,), jnp.float32),
        # per-layer weights pre-stacked on a leading layer axis, heads-major
        "wq": w((N_LAYERS, N_HEADS, HIDDEN, HEAD_DIM)),
        "bq": jnp.zeros((N_LAYERS, N_HEADS, 1, HEAD_DIM), jnp.float32),
        "wk": w((N_LAYERS, N_HEADS, HIDDEN, HEAD_DIM)),
        "bk": jnp.zeros((N_LAYERS, N_HEADS, 1, HEAD_DIM), jnp.float32),
        "wv": w((N_LAYERS, N_HEADS, HIDDEN, HEAD_DIM)),
        "bv": jnp.zeros((N_LAYERS, N_HEADS, 1, HEAD_DIM), jnp.float32),
        "wo": w((N_LAYERS, N_HEADS, HEAD_DIM, HIDDEN)),
        "bo": jnp.zeros((N_LAYERS, HIDDEN), jnp.float32),
        "ln1_g": jnp.ones((N_LAYERS, HIDDEN), jnp.float32),
        "ln1_b": jnp.zeros((N_LAYERS, HIDDEN), jnp.float32),
        "w1": w((N_LAYERS, HIDDEN, FFN)),
        "b1": jnp.zeros((N_LAYERS, FFN), jnp.float32),
        "w2": w((N_LAYERS, FFN, HIDDEN)),
        "b2": jnp.zeros((N_LAYERS, HIDDEN), jnp.float32),
        "ln2_g": jnp.ones((N_LAYERS, HIDDEN), jnp.float32),
        "ln2_b": jnp.zeros((N_LAYERS, HIDDEN), jnp.float32),
        "pool_w": w((HIDDEN, HIDDEN)),
        "pool_b": jnp.zeros((HIDDEN,), jnp.float32),
        "cls_w": w((HIDDEN, N_CLASSES)),
        "cls_b": jnp.zeros((N_CLASSES,), jnp.float32),
    }


# ------------------------------ forward pass --------------------------------

def nlp_model_forward(params, x, y=None):
    b, s = x.shape
    assert s <= MAX_POS, "sequence length exceeds positional embedding table"

    # token ids go straight into the kernel (embedding gather is in-kernel)
    ids = x.astype(jnp.int32).reshape(b, s, 1)
    # position + (all-zero) token-type embedding, summed once in the wrapper
    pos_type = (params["pos_emb"][:s]
                + params["type_emb"][0][None, :]).astype(jnp.float32)

    # lane-dense classifier weights (pad N_CLASSES=2 -> 128 lanes)
    cls_w_pad = jnp.zeros((HIDDEN, LANE), jnp.float32).at[:, :N_CLASSES].set(
        params["cls_w"])
    cls_b_pad = jnp.zeros((1, LANE), jnp.float32).at[0, :N_CLASSES].set(
        params["cls_b"])

    operands = (
        ids,
        params["word_emb"],
        pos_type,
        params["emb_ln_g"].reshape(1, HIDDEN),
        params["emb_ln_b"].reshape(1, HIDDEN),
        params["wq"], params["bq"],
        params["wk"], params["bk"],
        params["wv"], params["bv"],
        params["wo"], params["bo"].reshape(N_LAYERS, 1, HIDDEN),
        params["ln1_g"].reshape(N_LAYERS, 1, HIDDEN),
        params["ln1_b"].reshape(N_LAYERS, 1, HIDDEN),
        params["w1"], params["b1"].reshape(N_LAYERS, 1, FFN),
        params["w2"], params["b2"].reshape(N_LAYERS, 1, HIDDEN),
        params["ln2_g"].reshape(N_LAYERS, 1, HIDDEN),
        params["ln2_b"].reshape(N_LAYERS, 1, HIDDEN),
        params["pool_w"], params["pool_b"].reshape(1, HIDDEN),
        cls_w_pad, cls_b_pad,
    )

    def _rep_spec(t):
        n = t.ndim
        return pl.BlockSpec(tuple(t.shape), lambda i, n=n: (0,) * n)

    # token ids and logits are blocked per batch element; weights are shared
    in_specs = [pl.BlockSpec((1, s, 1), lambda i: (i, 0, 0))]
    in_specs += [_rep_spec(t) for t in operands[1:]]

    kernel = functools.partial(_bert_fused_kernel,
                               n_layers=N_LAYERS, n_heads=N_HEADS)

    logits_pad = pl.pallas_call(
        kernel,
        grid=(b,),
        out_shape=jax.ShapeDtypeStruct((b, 1, LANE), jnp.float32),
        in_specs=in_specs,
        out_specs=pl.BlockSpec((1, 1, LANE), lambda i: (i, 0, 0)),
        compiler_params=pltpu.CompilerParams(
            dimension_semantics=("parallel",)),   # shards batch over v7x TCs
    )(*operands)

    y_pred = logits_pad[:, 0, :N_CLASSES]          # self.cls output (B, 2)

    if y is not None:
        # CrossEntropyLoss(mean) on (B, 2) logits: plain JAX, no kernel launch
        logp = jax.nn.log_softmax(y_pred, axis=-1)
        nll = -jnp.take_along_axis(logp, y.reshape(-1, 1), axis=-1)
        return jnp.mean(nll)
    return y_pred


# ---------------------------------- main ------------------------------------

if __name__ == "__main__":
    key = jax.random.PRNGKey(0)
    pkey, xkey, ykey = jax.random.split(key, 3)
    params = init_params(pkey)

    B, S = 2, 8
    x = jax.random.randint(xkey, (B, S), 0, VOCAB, dtype=jnp.int32)
    y = jax.random.randint(ykey, (B,), 0, N_CLASSES, dtype=jnp.int32)

    infer = jax.jit(lambda p, xx: nlp_model_forward(p, xx))
    train = jax.jit(lambda p, xx, yy: nlp_model_forward(p, xx, yy))

    logits = infer(params, x)      # inference path: (B, N_CLASSES)
    loss = train(params, x, y)     # training path: scalar loss
    jax.block_until_ready((logits, loss))
    assert logits.shape == (B, N_CLASSES)
    assert loss.shape == ()
    assert bool(jnp.isfinite(loss))
    print("KERNEL_OK")
</pallas_src>

<mosaic_0001>
module attributes {stable_mosaic.version = 11 : i64} {
  func.func @_bert_fused_kernel(%arg0: i32, %arg1: memref<1x8x1xi32, #tpu.memory_space<vmem>>, %arg2: memref<100x32xf32, #tpu.memory_space<vmem>>, %arg3: memref<8x32xf32, #tpu.memory_space<vmem>>, %arg4: memref<1x32xf32, #tpu.memory_space<vmem>>, %arg5: memref<1x32xf32, #tpu.memory_space<vmem>>, %arg6: memref<2x4x32x8xf32, #tpu.memory_space<vmem>>, %arg7: memref<2x4x1x8xf32, #tpu.memory_space<vmem>>, %arg8: memref<2x4x32x8xf32, #tpu.memory_space<vmem>>, %arg9: memref<2x4x1x8xf32, #tpu.memory_space<vmem>>, %arg10: memref<2x4x32x8xf32, #tpu.memory_space<vmem>>, %arg11: memref<2x4x1x8xf32, #tpu.memory_space<vmem>>, %arg12: memref<2x4x8x32xf32, #tpu.memory_space<vmem>>, %arg13: memref<2x1x32xf32, #tpu.memory_space<vmem>>, %arg14: memref<2x1x32xf32, #tpu.memory_space<vmem>>, %arg15: memref<2x1x32xf32, #tpu.memory_space<vmem>>, %arg16: memref<2x32x64xf32, #tpu.memory_space<vmem>>, %arg17: memref<2x1x64xf32, #tpu.memory_space<vmem>>, %arg18: memref<2x64x32xf32, #tpu.memory_space<vmem>>, %arg19: memref<2x1x32xf32, #tpu.memory_space<vmem>>, %arg20: memref<2x1x32xf32, #tpu.memory_space<vmem>>, %arg21: memref<2x1x32xf32, #tpu.memory_space<vmem>>, %arg22: memref<32x32xf32, #tpu.memory_space<vmem>>, %arg23: memref<1x32xf32, #tpu.memory_space<vmem>>, %arg24: memref<32x128xf32, #tpu.memory_space<vmem>>, %arg25: memref<1x128xf32, #tpu.memory_space<vmem>>, %arg26: memref<1x1x128xf32, #tpu.memory_space<vmem>>) attributes {dimension_semantics = [#tpu.dimension_semantics<parallel>], iteration_bounds = array<i64: 2>, scalar_prefetch = 0 : i64, scratch_operands = 0 : i64, tpu.core_type = #tpu.core_type<tc>, window_params = [{transform_indices = @transform_0, window_bounds = array<i64: 1, 8, 1>}, {pipeline_mode = #tpu.pipeline_mode<synchronous>, transform_indices = @transform_1, window_bounds = array<i64: 100, 32>}, {pipeline_mode = #tpu.pipeline_mode<synchronous>, transform_indices = @transform_2, window_bounds = array<i64: 8, 32>}, {pipeline_mode = #tpu.pipeline_mode<synchronous>, transform_indices = @transform_3, window_bounds = array<i64: 1, 32>}, {pipeline_mode = #tpu.pipeline_mode<synchronous>, transform_indices = @transform_4, window_bounds = array<i64: 1, 32>}, {pipeline_mode = #tpu.pipeline_mode<synchronous>, transform_indices = @transform_5, window_bounds = array<i64: 2, 4, 32, 8>}, {pipeline_mode = #tpu.pipeline_mode<synchronous>, transform_indices = @transform_6, window_bounds = array<i64: 2, 4, 1, 8>}, {pipeline_mode = #tpu.pipeline_mode<synchronous>, transform_indices = @transform_7, window_bounds = array<i64: 2, 4, 32, 8>}, {pipeline_mode = #tpu.pipeline_mode<synchronous>, transform_indices = @transform_8, window_bounds = array<i64: 2, 4, 1, 8>}, {pipeline_mode = #tpu.pipeline_mode<synchronous>, transform_indices = @transform_9, window_bounds = array<i64: 2, 4, 32, 8>}, {pipeline_mode = #tpu.pipeline_mode<synchronous>, transform_indices = @transform_10, window_bounds = array<i64: 2, 4, 1, 8>}, {pipeline_mode = #tpu.pipeline_mode<synchronous>, transform_indices = @transform_11, window_bounds = array<i64: 2, 4, 8, 32>}, {pipeline_mode = #tpu.pipeline_mode<synchronous>, transform_indices = @transform_12, window_bounds = array<i64: 2, 1, 32>}, {pipeline_mode = #tpu.pipeline_mode<synchronous>, transform_indices = @transform_13, window_bounds = array<i64: 2, 1, 32>}, {pipeline_mode = #tpu.pipeline_mode<synchronous>, transform_indices = @transform_14, window_bounds = array<i64: 2, 1, 32>}, {pipeline_mode = #tpu.pipeline_mode<synchronous>, transform_indices = @transform_15, window_bounds = array<i64: 2, 32, 64>}, {pipeline_mode = #tpu.pipeline_mode<synchronous>, transform_indices = @transform_16, window_bounds = array<i64: 2, 1, 64>}, {pipeline_mode = #tpu.pipeline_mode<synchronous>, transform_indices = @transform_17, window_bounds = array<i64: 2, 64, 32>}, {pipeline_mode = #tpu.pipeline_mode<synchronous>, transform_indices = @transform_18, window_bounds = array<i64: 2, 1, 32>}, {pipeline_mode = #tpu.pipeline_mode<synchronous>, transform_indices = @transform_19, window_bounds = array<i64: 2, 1, 32>}, {pipeline_mode = #tpu.pipeline_mode<synchronous>, transform_indices = @transform_20, window_bounds = array<i64: 2, 1, 32>}, {pipeline_mode = #tpu.pipeline_mode<synchronous>, transform_indices = @transform_21, window_bounds = array<i64: 32, 32>}, {pipeline_mode = #tpu.pipeline_mode<synchronous>, transform_indices = @transform_22, window_bounds = array<i64: 1, 32>}, {pipeline_mode = #tpu.pipeline_mode<synchronous>, transform_indices = @transform_23, window_bounds = array<i64: 32, 128>}, {pipeline_mode = #tpu.pipeline_mode<synchronous>, transform_indices = @transform_24, window_bounds = array<i64: 1, 128>}, {transform_indices = @transform_25, window_bounds = array<i64: 1, 1, 128>}]} {
    %c0 = arith.constant 0 : index
    %c0_0 = arith.constant 0 : index
    %c0_1 = arith.constant 0 : index
    %0 = vector.load %arg1[%c0, %c0_0, %c0_1] : memref<1x8x1xi32, #tpu.memory_space<vmem>>, vector<1x8x1xi32>
    %1 = vector.shape_cast %0 : vector<1x8x1xi32> to vector<8x1xi32>
    %2 = tpu.iota {dimensions = array<i32: 1>} : vector<8x100xi32>
    %3 = vector.broadcast %1 : vector<8x1xi32> to vector<8x100xi32>
    %4 = arith.cmpi eq, %3, %2 : vector<8x100xi32>
    %5 = arith.extui %4 : vector<8x100xi1> to vector<8x100xi32>
    %6 = arith.sitofp %5 : vector<8x100xi32> to vector<8x100xf32>
    %c0_2 = arith.constant 0 : index
    %c0_3 = arith.constant 0 : index
    %7 = vector.load %arg2[%c0_2, %c0_3] : memref<100x32xf32, #tpu.memory_space<vmem>>, vector<100x32xf32>
    %cst = arith.constant dense<0.000000e+00> : vector<8x32xf32>
    %8 = tpu.matmul %6, %7, %cst {dimension_numbers = #tpu.dot_dimension_numbers<[1], [0], [0], [1], [0, 0, 1, 1], [], []>} : vector<8x100xf32>, vector<100x32xf32>, vector<8x32xf32> -> vector<8x32xf32>
    %c0_4 = arith.constant 0 : index
    %c0_5 = arith.constant 0 : index
    %9 = vector.load %arg3[%c0_4, %c0_5] : memref<8x32xf32, #tpu.memory_space<vmem>>, vector<8x32xf32>
    %10 = arith.addf %8, %9 : vector<8x32xf32>
    %c0_6 = arith.constant 0 : index
    %c0_7 = arith.constant 0 : index
    %11 = vector.load %arg4[%c0_6, %c0_7] : memref<1x32xf32, #tpu.memory_space<vmem>>, vector<1x32xf32>
    %c0_8 = arith.constant 0 : index
    %c0_9 = arith.constant 0 : index
    %12 = vector.load %arg5[%c0_8, %c0_9] : memref<1x32xf32, #tpu.memory_space<vmem>>, vector<1x32xf32>
    %cst_10 = arith.constant dense<0.000000e+00> : vector<8xf32>
    %13 = vector.multi_reduction <add>, %10, %cst_10 [1] : vector<8x32xf32> to vector<8xf32>
    %14 = vector.shape_cast %13 : vector<8xf32> to vector<8x1xf32>
    %cst_11 = arith.constant 3.200000e+01 : f32
    %15 = vector.broadcast %cst_11 : f32 to vector<8x1xf32>
    %16 = arith.divf %14, %15 : vector<8x1xf32>
    %17 = vector.broadcast %16 : vector<8x1xf32> to vector<8x32xf32>
    %18 = arith.subf %10, %17 : vector<8x32xf32>
    %19 = arith.mulf %18, %18 : vector<8x32xf32>
    %cst_12 = arith.constant dense<0.000000e+00> : vector<8xf32>
    %20 = vector.multi_reduction <add>, %19, %cst_12 [1] : vector<8x32xf32> to vector<8xf32>
    %21 = vector.shape_cast %20 : vector<8xf32> to vector<8x1xf32>
    %cst_13 = arith.constant 3.200000e+01 : f32
    %22 = vector.broadcast %cst_13 : f32 to vector<8x1xf32>
    %23 = arith.divf %21, %22 : vector<8x1xf32>
    %24 = vector.broadcast %16 : vector<8x1xf32> to vector<8x32xf32>
    %25 = arith.subf %10, %24 : vector<8x32xf32>
    %cst_14 = arith.constant 9.99999996E-13 : f32
    %26 = vector.broadcast %cst_14 : f32 to vector<8x1xf32>
    %27 = arith.addf %23, %26 : vector<8x1xf32>
    %28 = math.rsqrt %27 : vector<8x1xf32>
    %29 = vector.broadcast %28 : vector<8x1xf32> to vector<8x32xf32>
    %30 = arith.mulf %25, %29 : vector<8x32xf32>
    %31 = vector.broadcast %11 : vector<1x32xf32> to vector<8x32xf32>
    %32 = arith.mulf %30, %31 : vector<8x32xf32>
    %33 = vector.broadcast %12 : vector<1x32xf32> to vector<8x32xf32>
    %34 = arith.addf %32, %33 : vector<8x32xf32>
    %35 = vector.shape_cast %34 : vector<8x32xf32> to vector<1x8x32xf32>
    %36 = vector.broadcast %35 : vector<1x8x32xf32> to vector<4x8x32xf32>
    %c0_15 = arith.constant 0 : index
    %c0_16 = arith.constant 0 : index
    %c0_17 = arith.constant 0 : index
    %c0_18 = arith.constant 0 : index
    %37 = vector.load %arg6[%c0_15, %c0_16, %c0_17, %c0_18] : memref<2x4x32x8xf32, #tpu.memory_space<vmem>>, vector<1x4x32x8xf32>
    %38 = vector.shape_cast %37 : vector<1x4x32x8xf32> to vector<4x32x8xf32>
    "tpu.trace_start"() <{level = 10 : i32, message = "nsk,nkd->nsd"}> : () -> ()
    %cst_19 = arith.constant dense<0.000000e+00> : vector<4x8x8xf32>
    %39 = tpu.matmul %36, %38, %cst_19 {dimension_numbers = #tpu.dot_dimension_numbers<[2], [1], [1], [2], [0, 0, 0, 1, 1, 2], [0], [0]>} : vector<4x8x32xf32>, vector<4x32x8xf32>, vector<4x8x8xf32> -> vector<4x8x8xf32>
    "tpu.trace_stop"() : () -> ()
    %c0_20 = arith.constant 0 : index
    %c0_21 = arith.constant 0 : index
    %c0_22 = arith.constant 0 : index
    %c0_23 = arith.constant 0 : index
    %40 = vector.load %arg7[%c0_20, %c0_21, %c0_22, %c0_23] : memref<2x4x1x8xf32, #tpu.memory_space<vmem>>, vector<1x4x1x8xf32>
    %41 = vector.shape_cast %40 : vector<1x4x1x8xf32> to vector<4x1x8xf32>
    %42 = vector.broadcast %41 : vector<4x1x8xf32> to vector<4x8x8xf32>
    %43 = arith.addf %39, %42 : vector<4x8x8xf32>
    %c0_24 = arith.constant 0 : index
    %c0_25 = arith.constant 0 : index
    %c0_26 = arith.constant 0 : index
    %c0_27 = arith.constant 0 : index
    %44 = vector.load %arg8[%c0_24, %c0_25, %c0_26, %c0_27] : memref<2x4x32x8xf32, #tpu.memory_space<vmem>>, vector<1x4x32x8xf32>
    %45 = vector.shape_cast %44 : vector<1x4x32x8xf32> to vector<4x32x8xf32>
    "tpu.trace_start"() <{level = 10 : i32, message = "nsk,nkd->nsd"}> : () -> ()
    %cst_28 = arith.constant dense<0.000000e+00> : vector<4x8x8xf32>
    %46 = tpu.matmul %36, %45, %cst_28 {dimension_numbers = #tpu.dot_dimension_numbers<[2], [1], [1], [2], [0, 0, 0, 1, 1, 2], [0], [0]>} : vector<4x8x32xf32>, vector<4x32x8xf32>, vector<4x8x8xf32> -> vector<4x8x8xf32>
    "tpu.trace_stop"() : () -> ()
    %c0_29 = arith.constant 0 : index
    %c0_30 = arith.constant 0 : index
    %c0_31 = arith.constant 0 : index
    %c0_32 = arith.constant 0 : index
    %47 = vector.load %arg9[%c0_29, %c0_30, %c0_31, %c0_32] : memref<2x4x1x8xf32, #tpu.memory_space<vmem>>, vector<1x4x1x8xf32>
    %48 = vector.shape_cast %47 : vector<1x4x1x8xf32> to vector<4x1x8xf32>
    %49 = vector.broadcast %48 : vector<4x1x8xf32> to vector<4x8x8xf32>
    %50 = arith.addf %46, %49 : vector<4x8x8xf32>
    %c0_33 = arith.constant 0 : index
    %c0_34 = arith.constant 0 : index
    %c0_35 = arith.constant 0 : index
    %c0_36 = arith.constant 0 : index
    %51 = vector.load %arg10[%c0_33, %c0_34, %c0_35, %c0_36] : memref<2x4x32x8xf32, #tpu.memory_space<vmem>>, vector<1x4x32x8xf32>
    %52 = vector.shape_cast %51 : vector<1x4x32x8xf32> to vector<4x32x8xf32>
    "tpu.trace_start"() <{level = 10 : i32, message = "nsk,nkd->nsd"}> : () -> ()
    %cst_37 = arith.constant dense<0.000000e+00> : vector<4x8x8xf32>
    %53 = tpu.matmul %36, %52, %cst_37 {dimension_numbers = #tpu.dot_dimension_numbers<[2], [1], [1], [2], [0, 0, 0, 1, 1, 2], [0], [0]>} : vector<4x8x32xf32>, vector<4x32x8xf32>, vector<4x8x8xf32> -> vector<4x8x8xf32>
    "tpu.trace_stop"() : () -> ()
    %c0_38 = arith.constant 0 : index
    %c0_39 = arith.constant 0 : index
    %c0_40 = arith.constant 0 : index
    %c0_41 = arith.constant 0 : index
    %54 = vector.load %arg11[%c0_38, %c0_39, %c0_40, %c0_41] : memref<2x4x1x8xf32, #tpu.memory_space<vmem>>, vector<1x4x1x8xf32>
    %55 = vector.shape_cast %54 : vector<1x4x1x8xf32> to vector<4x1x8xf32>
    %56 = vector.broadcast %55 : vector<4x1x8xf32> to vector<4x8x8xf32>
    %57 = arith.addf %53, %56 : vector<4x8x8xf32>
    "tpu.trace_start"() <{level = 10 : i32, message = "nqd,nkd->nqk"}> : () -> ()
    %cst_42 = arith.constant dense<0.000000e+00> : vector<4x8x8xf32>
    %58 = tpu.matmul %43, %50, %cst_42 {dimension_numbers = #tpu.dot_dimension_numbers<[2], [2], [1], [1], [0, 0, 0, 1, 1, 1], [0], [0]>} : vector<4x8x8xf32>, vector<4x8x8xf32>, vector<4x8x8xf32> -> vector<4x8x8xf32>
    "tpu.trace_stop"() : () -> ()
    %cst_43 = arith.constant 0.353553385 : f32
    %59 = vector.broadcast %cst_43 : f32 to vector<4x8x8xf32>
    %60 = arith.mulf %58, %59 : vector<4x8x8xf32>
    %cst_44 = arith.constant dense<0xFF800000> : vector<4x8xf32>
    %61 = vector.multi_reduction <maximumf>, %60, %cst_44 [2] : vector<4x8x8xf32> to vector<4x8xf32>
    %62 = vector.shape_cast %61 : vector<4x8xf32> to vector<4x8x1xf32>
    %63 = vector.broadcast %62 : vector<4x8x1xf32> to vector<4x8x8xf32>
    %64 = arith.subf %60, %63 : vector<4x8x8xf32>
    %65 = math.exp %64 : vector<4x8x8xf32>
    %cst_45 = arith.constant dense<0.000000e+00> : vector<4x8xf32>
    %66 = vector.multi_reduction <add>, %65, %cst_45 [2] : vector<4x8x8xf32> to vector<4x8xf32>
    %67 = vector.shape_cast %66 : vector<4x8xf32> to vector<4x8x1xf32>
    %68 = vector.broadcast %67 : vector<4x8x1xf32> to vector<4x8x8xf32>
    %69 = arith.divf %65, %68 : vector<4x8x8xf32>
    "tpu.trace_start"() <{level = 10 : i32, message = "nqk,nkd->nqd"}> : () -> ()
    %cst_46 = arith.constant dense<0.000000e+00> : vector<4x8x8xf32>
    %70 = tpu.matmul %69, %57, %cst_46 {dimension_numbers = #tpu.dot_dimension_numbers<[2], [1], [1], [2], [0, 0, 0, 1, 1, 2], [0], [0]>} : vector<4x8x8xf32>, vector<4x8x8xf32>, vector<4x8x8xf32> -> vector<4x8x8xf32>
    "tpu.trace_stop"() : () -> ()
    %c0_47 = arith.constant 0 : index
    %c0_48 = arith.constant 0 : index
    %c0_49 = arith.constant 0 : index
    %c0_50 = arith.constant 0 : index
    %71 = vector.load %arg12[%c0_47, %c0_48, %c0_49, %c0_50] : memref<2x4x8x32xf32, #tpu.memory_space<vmem>>, vector<1x4x8x32xf32>
    %72 = vector.shape_cast %71 : vector<1x4x8x32xf32> to vector<4x8x32xf32>
    "tpu.trace_start"() <{level = 10 : i32, message = "nqd,ndm->nqm"}> : () -> ()
    %cst_51 = arith.constant dense<0.000000e+00> : vector<4x8x32xf32>
    %73 = tpu.matmul %70, %72, %cst_51 {dimension_numbers = #tpu.dot_dimension_numbers<[2], [1], [1], [2], [0, 0, 0, 1, 1, 2], [0], [0]>} : vector<4x8x8xf32>, vector<4x8x32xf32>, vector<4x8x32xf32> -> vector<4x8x32xf32>
    "tpu.trace_stop"() : () -> ()
    %cst_52 = arith.constant dense<0.000000e+00> : vector<8x32xf32>
    %74 = vector.multi_reduction <add>, %73, %cst_52 [0] : vector<4x8x32xf32> to vector<8x32xf32>
    %c0_53 = arith.constant 0 : index
    %c0_54 = arith.constant 0 : index
    %c0_55 = arith.constant 0 : index
    %75 = vector.load %arg13[%c0_53, %c0_54, %c0_55] : memref<2x1x32xf32, #tpu.memory_space<vmem>>, vector<1x1x32xf32>
    %76 = vector.shape_cast %75 : vector<1x1x32xf32> to vector<1x32xf32>
    %77 = vector.broadcast %76 : vector<1x32xf32> to vector<8x32xf32>
    %78 = arith.addf %74, %77 : vector<8x32xf32>
    %79 = arith.addf %34, %78 : vector<8x32xf32>
    %c0_56 = arith.constant 0 : index
    %c0_57 = arith.constant 0 : index
    %c0_58 = arith.constant 0 : index
    %80 = vector.load %arg14[%c0_56, %c0_57, %c0_58] : memref<2x1x32xf32, #tpu.memory_space<vmem>>, vector<1x1x32xf32>
    %81 = vector.shape_cast %80 : vector<1x1x32xf32> to vector<1x32xf32>
    %c0_59 = arith.constant 0 : index
    %c0_60 = arith.constant 0 : index
    %c0_61 = arith.constant 0 : index
    %82 = vector.load %arg15[%c0_59, %c0_60, %c0_61] : memref<2x1x32xf32, #tpu.memory_space<vmem>>, vector<1x1x32xf32>
    %83 = vector.shape_cast %82 : vector<1x1x32xf32> to vector<1x32xf32>
    %cst_62 = arith.constant dense<0.000000e+00> : vector<8xf32>
    %84 = vector.multi_reduction <add>, %79, %cst_62 [1] : vector<8x32xf32> to vector<8xf32>
    %85 = vector.shape_cast %84 : vector<8xf32> to vector<8x1xf32>
    %cst_63 = arith.constant 3.200000e+01 : f32
    %86 = vector.broadcast %cst_63 : f32 to vector<8x1xf32>
    %87 = arith.divf %85, %86 : vector<8x1xf32>
    %88 = vector.broadcast %87 : vector<8x1xf32> to vector<8x32xf32>
    %89 = arith.subf %79, %88 : vector<8x32xf32>
    %90 = arith.mulf %89, %89 : vector<8x32xf32>
    %cst_64 = arith.constant dense<0.000000e+00> : vector<8xf32>
    %91 = vector.multi_reduction <add>, %90, %cst_64 [1] : vector<8x32xf32> to vector<8xf32>
    %92 = vector.shape_cast %91 : vector<8xf32> to vector<8x1xf32>
    %cst_65 = arith.constant 3.200000e+01 : f32
    %93 = vector.broadcast %cst_65 : f32 to vector<8x1xf32>
    %94 = arith.divf %92, %93 : vector<8x1xf32>
    %95 = vector.broadcast %87 : vector<8x1xf32> to vector<8x32xf32>
    %96 = arith.subf %79, %95 : vector<8x32xf32>
    %cst_66 = arith.constant 9.99999996E-13 : f32
    %97 = vector.broadcast %cst_66 : f32 to vector<8x1xf32>
    %98 = arith.addf %94, %97 : vector<8x1xf32>
    %99 = math.rsqrt %98 : vector<8x1xf32>
    %100 = vector.broadcast %99 : vector<8x1xf32> to vector<8x32xf32>
    %101 = arith.mulf %96, %100 : vector<8x32xf32>
    %102 = vector.broadcast %81 : vector<1x32xf32> to vector<8x32xf32>
    %103 = arith.mulf %101, %102 : vector<8x32xf32>
    %104 = vector.broadcast %83 : vector<1x32xf32> to vector<8x32xf32>
    %105 = arith.addf %103, %104 : vector<8x32xf32>
    %c0_67 = arith.constant 0 : index
    %c0_68 = arith.constant 0 : index
    %c0_69 = arith.constant 0 : index
    %106 = vector.load %arg16[%c0_67, %c0_68, %c0_69] : memref<2x32x64xf32, #tpu.memory_space<vmem>>, vector<1x32x64xf32>
    %107 = vector.shape_cast %106 : vector<1x32x64xf32> to vector<32x64xf32>
    %cst_70 = arith.constant dense<0.000000e+00> : vector<8x64xf32>
    %108 = tpu.matmul %105, %107, %cst_70 {dimension_numbers = #tpu.dot_dimension_numbers<[1], [0], [0], [1], [0, 0, 1, 1], [], []>} : vector<8x32xf32>, vector<32x64xf32>, vector<8x64xf32> -> vector<8x64xf32>
    %c0_71 = arith.constant 0 : index
    %c0_72 = arith.constant 0 : index
    %c0_73 = arith.constant 0 : index
    %109 = vector.load %arg17[%c0_71, %c0_72, %c0_73] : memref<2x1x64xf32, #tpu.memory_space<vmem>>, vector<1x1x64xf32>
    %110 = vector.shape_cast %109 : vector<1x1x64xf32> to vector<1x64xf32>
    %111 = vector.broadcast %110 : vector<1x64xf32> to vector<8x64xf32>
    %112 = arith.addf %108, %111 : vector<8x64xf32>
    %113 = arith.mulf %112, %112 : vector<8x64xf32>
    %114 = arith.mulf %112, %113 : vector<8x64xf32>
    %cst_74 = arith.constant 4.471500e-02 : f32
    %115 = vector.broadcast %cst_74 : f32 to vector<8x64xf32>
    %116 = arith.mulf %115, %114 : vector<8x64xf32>
    %117 = arith.addf %112, %116 : vector<8x64xf32>
    %cst_75 = arith.constant 0.797884583 : f32
    %118 = vector.broadcast %cst_75 : f32 to vector<8x64xf32>
    %119 = arith.mulf %118, %117 : vector<8x64xf32>
    %120 = math.tanh %119 : vector<8x64xf32>
    %cst_76 = arith.constant 1.000000e+00 : f32
    %121 = vector.broadcast %cst_76 : f32 to vector<8x64xf32>
    %122 = arith.addf %121, %120 : vector<8x64xf32>
    %cst_77 = arith.constant 5.000000e-01 : f32
    %123 = vector.broadcast %cst_77 : f32 to vector<8x64xf32>
    %124 = arith.mulf %123, %122 : vector<8x64xf32>
    %125 = arith.mulf %112, %124 : vector<8x64xf32>
    %c0_78 = arith.constant 0 : index
    %c0_79 = arith.constant 0 : index
    %c0_80 = arith.constant 0 : index
    %126 = vector.load %arg18[%c0_78, %c0_79, %c0_80] : memref<2x64x32xf32, #tpu.memory_space<vmem>>, vector<1x64x32xf32>
    %127 = vector.shape_cast %126 : vector<1x64x32xf32> to vector<64x32xf32>
    %cst_81 = arith.constant dense<0.000000e+00> : vector<8x32xf32>
    %128 = tpu.matmul %125, %127, %cst_81 {dimension_numbers = #tpu.dot_dimension_numbers<[1], [0], [0], [1], [0, 0, 1, 1], [], []>} : vector<8x64xf32>, vector<64x32xf32>, vector<8x32xf32> -> vector<8x32xf32>
    %c0_82 = arith.constant 0 : index
    %c0_83 = arith.constant 0 : index
    %c0_84 = arith.constant 0 : index
    %129 = vector.load %arg19[%c0_82, %c0_83, %c0_84] : memref<2x1x32xf32, #tpu.memory_space<vmem>>, vector<1x1x32xf32>
    %130 = vector.shape_cast %129 : vector<1x1x32xf32> to vector<1x32xf32>
    %131 = vector.broadcast %130 : vector<1x32xf32> to vector<8x32xf32>
    %132 = arith.addf %128, %131 : vector<8x32xf32>
    %133 = arith.addf %105, %132 : vector<8x32xf32>
    %c0_85 = arith.constant 0 : index
    %c0_86 = arith.constant 0 : index
    %c0_87 = arith.constant 0 : index
    %134 = vector.load %arg20[%c0_85, %c0_86, %c0_87] : memref<2x1x32xf32, #tpu.memory_space<vmem>>, vector<1x1x32xf32>
    %135 = vector.shape_cast %134 : vector<1x1x32xf32> to vector<1x32xf32>
    %c0_88 = arith.constant 0 : index
    %c0_89 = arith.constant 0 : index
    %c0_90 = arith.constant 0 : index
    %136 = vector.load %arg21[%c0_88, %c0_89, %c0_90] : memref<2x1x32xf32, #tpu.memory_space<vmem>>, vector<1x1x32xf32>
    %137 = vector.shape_cast %136 : vector<1x1x32xf32> to vector<1x32xf32>
    %cst_91 = arith.constant dense<0.000000e+00> : vector<8xf32>
    %138 = vector.multi_reduction <add>, %133, %cst_91 [1] : vector<8x32xf32> to vector<8xf32>
    %139 = vector.shape_cast %138 : vector<8xf32> to vector<8x1xf32>
    %cst_92 = arith.constant 3.200000e+01 : f32
    %140 = vector.broadcast %cst_92 : f32 to vector<8x1xf32>
    %141 = arith.divf %139, %140 : vector<8x1xf32>
    %142 = vector.broadcast %141 : vector<8x1xf32> to vector<8x32xf32>
    %143 = arith.subf %133, %142 : vector<8x32xf32>
    %144 = arith.mulf %143, %143 : vector<8x32xf32>
    %cst_93 = arith.constant dense<0.000000e+00> : vector<8xf32>
    %145 = vector.multi_reduction <add>, %144, %cst_93 [1] : vector<8x32xf32> to vector<8xf32>
    %146 = vector.shape_cast %145 : vector<8xf32> to vector<8x1xf32>
    %cst_94 = arith.constant 3.200000e+01 : f32
    %147 = vector.broadcast %cst_94 : f32 to vector<8x1xf32>
    %148 = arith.divf %146, %147 : vector<8x1xf32>
    %149 = vector.broadcast %141 : vector<8x1xf32> to vector<8x32xf32>
    %150 = arith.subf %133, %149 : vector<8x32xf32>
    %cst_95 = arith.constant 9.99999996E-13 : f32
    %151 = vector.broadcast %cst_95 : f32 to vector<8x1xf32>
    %152 = arith.addf %148, %151 : vector<8x1xf32>
    %153 = math.rsqrt %152 : vector<8x1xf32>
    %154 = vector.broadcast %153 : vector<8x1xf32> to vector<8x32xf32>
    %155 = arith.mulf %150, %154 : vector<8x32xf32>
    %156 = vector.broadcast %135 : vector<1x32xf32> to vector<8x32xf32>
    %157 = arith.mulf %155, %156 : vector<8x32xf32>
    %158 = vector.broadcast %137 : vector<1x32xf32> to vector<8x32xf32>
    %159 = arith.addf %157, %158 : vector<8x32xf32>
    %160 = vector.shape_cast %159 : vector<8x32xf32> to vector<1x8x32xf32>
    %161 = vector.broadcast %160 : vector<1x8x32xf32> to vector<4x8x32xf32>
    %c1 = arith.constant 1 : index
    %c0_96 = arith.constant 0 : index
    %c0_97 = arith.constant 0 : index
    %c0_98 = arith.constant 0 : index
    %162 = vector.load %arg6[%c1, %c0_96, %c0_97, %c0_98] : memref<2x4x32x8xf32, #tpu.memory_space<vmem>>, vector<1x4x32x8xf32>
    %163 = vector.shape_cast %162 : vector<1x4x32x8xf32> to vector<4x32x8xf32>
    "tpu.trace_start"() <{level = 10 : i32, message = "nsk,nkd->nsd"}> : () -> ()
    %cst_99 = arith.constant dense<0.000000e+00> : vector<4x8x8xf32>
    %164 = tpu.matmul %161, %163, %cst_99 {dimension_numbers = #tpu.dot_dimension_numbers<[2], [1], [1], [2], [0, 0, 0, 1, 1, 2], [0], [0]>} : vector<4x8x32xf32>, vector<4x32x8xf32>, vector<4x8x8xf32> -> vector<4x8x8xf32>
    "tpu.trace_stop"() : () -> ()
    %c1_100 = arith.constant 1 : index
    %c0_101 = arith.constant 0 : index
    %c0_102 = arith.constant 0 : index
    %c0_103 = arith.constant 0 : index
    %165 = vector.load %arg7[%c1_100, %c0_101, %c0_102, %c0_103] : memref<2x4x1x8xf32, #tpu.memory_space<vmem>>, vector<1x4x1x8xf32>
    %166 = vector.shape_cast %165 : vector<1x4x1x8xf32> to vector<4x1x8xf32>
    %167 = vector.broadcast %166 : vector<4x1x8xf32> to vector<4x8x8xf32>
    %168 = arith.addf %164, %167 : vector<4x8x8xf32>
    %c1_104 = arith.constant 1 : index
    %c0_105 = arith.constant 0 : index
    %c0_106 = arith.constant 0 : index
    %c0_107 = arith.constant 0 : index
    %169 = vector.load %arg8[%c1_104, %c0_105, %c0_106, %c0_107] : memref<2x4x32x8xf32, #tpu.memory_space<vmem>>, vector<1x4x32x8xf32>
    %170 = vector.shape_cast %169 : vector<1x4x32x8xf32> to vector<4x32x8xf32>
    "tpu.trace_start"() <{level = 10 : i32, message = "nsk,nkd->nsd"}> : () -> ()
    %cst_108 = arith.constant dense<0.000000e+00> : vector<4x8x8xf32>
    %171 = tpu.matmul %161, %170, %cst_108 {dimension_numbers = #tpu.dot_dimension_numbers<[2], [1], [1], [2], [0, 0, 0, 1, 1, 2], [0], [0]>} : vector<4x8x32xf32>, vector<4x32x8xf32>, vector<4x8x8xf32> -> vector<4x8x8xf32>
    "tpu.trace_stop"() : () -> ()
    %c1_109 = arith.constant 1 : index
    %c0_110 = arith.constant 0 : index
    %c0_111 = arith.constant 0 : index
    %c0_112 = arith.constant 0 : index
    %172 = vector.load %arg9[%c1_109, %c0_110, %c0_111, %c0_112] : memref<2x4x1x8xf32, #tpu.memory_space<vmem>>, vector<1x4x1x8xf32>
    %173 = vector.shape_cast %172 : vector<1x4x1x8xf32> to vector<4x1x8xf32>
    %174 = vector.broadcast %173 : vector<4x1x8xf32> to vector<4x8x8xf32>
    %175 = arith.addf %171, %174 : vector<4x8x8xf32>
    %c1_113 = arith.constant 1 : index
    %c0_114 = arith.constant 0 : index
    %c0_115 = arith.constant 0 : index
    %c0_116 = arith.constant 0 : index
    %176 = vector.load %arg10[%c1_113, %c0_114, %c0_115, %c0_116] : memref<2x4x32x8xf32, #tpu.memory_space<vmem>>, vector<1x4x32x8xf32>
    %177 = vector.shape_cast %176 : vector<1x4x32x8xf32> to vector<4x32x8xf32>
    "tpu.trace_start"() <{level = 10 : i32, message = "nsk,nkd->nsd"}> : () -> ()
    %cst_117 = arith.constant dense<0.000000e+00> : vector<4x8x8xf32>
    %178 = tpu.matmul %161, %177, %cst_117 {dimension_numbers = #tpu.dot_dimension_numbers<[2], [1], [1], [2], [0, 0, 0, 1, 1, 2], [0], [0]>} : vector<4x8x32xf32>, vector<4x32x8xf32>, vector<4x8x8xf32> -> vector<4x8x8xf32>
    "tpu.trace_stop"() : () -> ()
    %c1_118 = arith.constant 1 : index
    %c0_119 = arith.constant 0 : index
    %c0_120 = arith.constant 0 : index
    %c0_121 = arith.constant 0 : index
    %179 = vector.load %arg11[%c1_118, %c0_119, %c0_120, %c0_121] : memref<2x4x1x8xf32, #tpu.memory_space<vmem>>, vector<1x4x1x8xf32>
    %180 = vector.shape_cast %179 : vector<1x4x1x8xf32> to vector<4x1x8xf32>
    %181 = vector.broadcast %180 : vector<4x1x8xf32> to vector<4x8x8xf32>
    %182 = arith.addf %178, %181 : vector<4x8x8xf32>
    "tpu.trace_start"() <{level = 10 : i32, message = "nqd,nkd->nqk"}> : () -> ()
    %cst_122 = arith.constant dense<0.000000e+00> : vector<4x8x8xf32>
    %183 = tpu.matmul %168, %175, %cst_122 {dimension_numbers = #tpu.dot_dimension_numbers<[2], [2], [1], [1], [0, 0, 0, 1, 1, 1], [0], [0]>} : vector<4x8x8xf32>, vector<4x8x8xf32>, vector<4x8x8xf32> -> vector<4x8x8xf32>
    "tpu.trace_stop"() : () -> ()
    %cst_123 = arith.constant 0.353553385 : f32
    %184 = vector.broadcast %cst_123 : f32 to vector<4x8x8xf32>
    %185 = arith.mulf %183, %184 : vector<4x8x8xf32>
    %cst_124 = arith.constant dense<0xFF800000> : vector<4x8xf32>
    %186 = vector.multi_reduction <maximumf>, %185, %cst_124 [2] : vector<4x8x8xf32> to vector<4x8xf32>
    %187 = vector.shape_cast %186 : vector<4x8xf32> to vector<4x8x1xf32>
    %188 = vector.broadcast %187 : vector<4x8x1xf32> to vector<4x8x8xf32>
    %189 = arith.subf %185, %188 : vector<4x8x8xf32>
    %190 = math.exp %189 : vector<4x8x8xf32>
    %cst_125 = arith.constant dense<0.000000e+00> : vector<4x8xf32>
    %191 = vector.multi_reduction <add>, %190, %cst_125 [2] : vector<4x8x8xf32> to vector<4x8xf32>
    %192 = vector.shape_cast %191 : vector<4x8xf32> to vector<4x8x1xf32>
    %193 = vector.broadcast %192 : vector<4x8x1xf32> to vector<4x8x8xf32>
    %194 = arith.divf %190, %193 : vector<4x8x8xf32>
    "tpu.trace_start"() <{level = 10 : i32, message = "nqk,nkd->nqd"}> : () -> ()
    %cst_126 = arith.constant dense<0.000000e+00> : vector<4x8x8xf32>
    %195 = tpu.matmul %194, %182, %cst_126 {dimension_numbers = #tpu.dot_dimension_numbers<[2], [1], [1], [2], [0, 0, 0, 1, 1, 2], [0], [0]>} : vector<4x8x8xf32>, vector<4x8x8xf32>, vector<4x8x8xf32> -> vector<4x8x8xf32>
    "tpu.trace_stop"() : () -> ()
    %c1_127 = arith.constant 1 : index
    %c0_128 = arith.constant 0 : index
    %c0_129 = arith.constant 0 : index
    %c0_130 = arith.constant 0 : index
    %196 = vector.load %arg12[%c1_127, %c0_128, %c0_129, %c0_130] : memref<2x4x8x32xf32, #tpu.memory_space<vmem>>, vector<1x4x8x32xf32>
    %197 = vector.shape_cast %196 : vector<1x4x8x32xf32> to vector<4x8x32xf32>
    "tpu.trace_start"() <{level = 10 : i32, message = "nqd,ndm->nqm"}> : () -> ()
    %cst_131 = arith.constant dense<0.000000e+00> : vector<4x8x32xf32>
    %198 = tpu.matmul %195, %197, %cst_131 {dimension_numbers = #tpu.dot_dimension_numbers<[2], [1], [1], [2], [0, 0, 0, 1, 1, 2], [0], [0]>} : vector<4x8x8xf32>, vector<4x8x32xf32>, vector<4x8x32xf32> -> vector<4x8x32xf32>
    "tpu.trace_stop"() : () -> ()
    %cst_132 = arith.constant dense<0.000000e+00> : vector<8x32xf32>
    %199 = vector.multi_reduction <add>, %198, %cst_132 [0] : vector<4x8x32xf32> to vector<8x32xf32>
    %c1_133 = arith.constant 1 : index
    %c0_134 = arith.constant 0 : index
    %c0_135 = arith.constant 0 : index
    %200 = vector.load %arg13[%c1_133, %c0_134, %c0_135] : memref<2x1x32xf32, #tpu.memory_space<vmem>>, vector<1x1x32xf32>
    %201 = vector.shape_cast %200 : vector<1x1x32xf32> to vector<1x32xf32>
    %202 = vector.broadcast %201 : vector<1x32xf32> to vector<8x32xf32>
    %203 = arith.addf %199, %202 : vector<8x32xf32>
    %204 = arith.addf %159, %203 : vector<8x32xf32>
    %c1_136 = arith.constant 1 : index
    %c0_137 = arith.constant 0 : index
    %c0_138 = arith.constant 0 : index
    %205 = vector.load %arg14[%c1_136, %c0_137, %c0_138] : memref<2x1x32xf32, #tpu.memory_space<vmem>>, vector<1x1x32xf32>
    %206 = vector.shape_cast %205 : vector<1x1x32xf32> to vector<1x32xf32>
    %c1_139 = arith.constant 1 : index
    %c0_140 = arith.constant 0 : index
    %c0_141 = arith.constant 0 : index
    %207 = vector.load %arg15[%c1_139, %c0_140, %c0_141] : memref<2x1x32xf32, #tpu.memory_space<vmem>>, vector<1x1x32xf32>
    %208 = vector.shape_cast %207 : vector<1x1x32xf32> to vector<1x32xf32>
    %cst_142 = arith.constant dense<0.000000e+00> : vector<8xf32>
    %209 = vector.multi_reduction <add>, %204, %cst_142 [1] : vector<8x32xf32> to vector<8xf32>
    %210 = vector.shape_cast %209 : vector<8xf32> to vector<8x1xf32>
    %cst_143 = arith.constant 3.200000e+01 : f32
    %211 = vector.broadcast %cst_143 : f32 to vector<8x1xf32>
    %212 = arith.divf %210, %211 : vector<8x1xf32>
    %213 = vector.broadcast %212 : vector<8x1xf32> to vector<8x32xf32>
    %214 = arith.subf %204, %213 : vector<8x32xf32>
    %215 = arith.mulf %214, %214 : vector<8x32xf32>
    %cst_144 = arith.constant dense<0.000000e+00> : vector<8xf32>
    %216 = vector.multi_reduction <add>, %215, %cst_144 [1] : vector<8x32xf32> to vector<8xf32>
    %217 = vector.shape_cast %216 : vector<8xf32> to vector<8x1xf32>
    %cst_145 = arith.constant 3.200000e+01 : f32
    %218 = vector.broadcast %cst_145 : f32 to vector<8x1xf32>
    %219 = arith.divf %217, %218 : vector<8x1xf32>
    %220 = vector.broadcast %212 : vector<8x1xf32> to vector<8x32xf32>
    %221 = arith.subf %204, %220 : vector<8x32xf32>
    %cst_146 = arith.constant 9.99999996E-13 : f32
    %222 = vector.broadcast %cst_146 : f32 to vector<8x1xf32>
    %223 = arith.addf %219, %222 : vector<8x1xf32>
    %224 = math.rsqrt %223 : vector<8x1xf32>
    %225 = vector.broadcast %224 : vector<8x1xf32> to vector<8x32xf32>
    %226 = arith.mulf %221, %225 : vector<8x32xf32>
    %227 = vector.broadcast %206 : vector<1x32xf32> to vector<8x32xf32>
    %228 = arith.mulf %226, %227 : vector<8x32xf32>
    %229 = vector.broadcast %208 : vector<1x32xf32> to vector<8x32xf32>
    %230 = arith.addf %228, %229 : vector<8x32xf32>
    %c1_147 = arith.constant 1 : index
    %c0_148 = arith.constant 0 : index
    %c0_149 = arith.constant 0 : index
    %231 = vector.load %arg16[%c1_147, %c0_148, %c0_149] : memref<2x32x64xf32, #tpu.memory_space<vmem>>, vector<1x32x64xf32>
    %232 = vector.shape_cast %231 : vector<1x32x64xf32> to vector<32x64xf32>
    %cst_150 = arith.constant dense<0.000000e+00> : vector<8x64xf32>
    %233 = tpu.matmul %230, %232, %cst_150 {dimension_numbers = #tpu.dot_dimension_numbers<[1], [0], [0], [1], [0, 0, 1, 1], [], []>} : vector<8x32xf32>, vector<32x64xf32>, vector<8x64xf32> -> vector<8x64xf32>
    %c1_151 = arith.constant 1 : index
    %c0_152 = arith.constant 0 : index
    %c0_153 = arith.constant 0 : index
    %234 = vector.load %arg17[%c1_151, %c0_152, %c0_153] : memref<2x1x64xf32, #tpu.memory_space<vmem>>, vector<1x1x64xf32>
    %235 = vector.shape_cast %234 : vector<1x1x64xf32> to vector<1x64xf32>
    %236 = vector.broadcast %235 : vector<1x64xf32> to vector<8x64xf32>
    %237 = arith.addf %233, %236 : vector<8x64xf32>
    %238 = arith.mulf %237, %237 : vector<8x64xf32>
    %239 = arith.mulf %237, %238 : vector<8x64xf32>
    %cst_154 = arith.constant 4.471500e-02 : f32
    %240 = vector.broadcast %cst_154 : f32 to vector<8x64xf32>
    %241 = arith.mulf %240, %239 : vector<8x64xf32>
    %242 = arith.addf %237, %241 : vector<8x64xf32>
    %cst_155 = arith.constant 0.797884583 : f32
    %243 = vector.broadcast %cst_155 : f32 to vector<8x64xf32>
    %244 = arith.mulf %243, %242 : vector<8x64xf32>
    %245 = math.tanh %244 : vector<8x64xf32>
    %cst_156 = arith.constant 1.000000e+00 : f32
    %246 = vector.broadcast %cst_156 : f32 to vector<8x64xf32>
    %247 = arith.addf %246, %245 : vector<8x64xf32>
    %cst_157 = arith.constant 5.000000e-01 : f32
    %248 = vector.broadcast %cst_157 : f32 to vector<8x64xf32>
    %249 = arith.mulf %248, %247 : vector<8x64xf32>
    %250 = arith.mulf %237, %249 : vector<8x64xf32>
    %c1_158 = arith.constant 1 : index
    %c0_159 = arith.constant 0 : index
    %c0_160 = arith.constant 0 : index
    %251 = vector.load %arg18[%c1_158, %c0_159, %c0_160] : memref<2x64x32xf32, #tpu.memory_space<vmem>>, vector<1x64x32xf32>
    %252 = vector.shape_cast %251 : vector<1x64x32xf32> to vector<64x32xf32>
    %cst_161 = arith.constant dense<0.000000e+00> : vector<8x32xf32>
    %253 = tpu.matmul %250, %252, %cst_161 {dimension_numbers = #tpu.dot_dimension_numbers<[1], [0], [0], [1], [0, 0, 1, 1], [], []>} : vector<8x64xf32>, vector<64x32xf32>, vector<8x32xf32> -> vector<8x32xf32>
    %c1_162 = arith.constant 1 : index
    %c0_163 = arith.constant 0 : index
    %c0_164 = arith.constant 0 : index
    %254 = vector.load %arg19[%c1_162, %c0_163, %c0_164] : memref<2x1x32xf32, #tpu.memory_space<vmem>>, vector<1x1x32xf32>
    %255 = vector.shape_cast %254 : vector<1x1x32xf32> to vector<1x32xf32>
    %256 = vector.broadcast %255 : vector<1x32xf32> to vector<8x32xf32>
    %257 = arith.addf %253, %256 : vector<8x32xf32>
    %258 = arith.addf %230, %257 : vector<8x32xf32>
    %c1_165 = arith.constant 1 : index
    %c0_166 = arith.constant 0 : index
    %c0_167 = arith.constant 0 : index
    %259 = vector.load %arg20[%c1_165, %c0_166, %c0_167] : memref<2x1x32xf32, #tpu.memory_space<vmem>>, vector<1x1x32xf32>
    %260 = vector.shape_cast %259 : vector<1x1x32xf32> to vector<1x32xf32>
    %c1_168 = arith.constant 1 : index
    %c0_169 = arith.constant 0 : index
    %c0_170 = arith.constant 0 : index
    %261 = vector.load %arg21[%c1_168, %c0_169, %c0_170] : memref<2x1x32xf32, #tpu.memory_space<vmem>>, vector<1x1x32xf32>
    %262 = vector.shape_cast %261 : vector<1x1x32xf32> to vector<1x32xf32>
    %cst_171 = arith.constant dense<0.000000e+00> : vector<8xf32>
    %263 = vector.multi_reduction <add>, %258, %cst_171 [1] : vector<8x32xf32> to vector<8xf32>
    %264 = vector.shape_cast %263 : vector<8xf32> to vector<8x1xf32>
    %cst_172 = arith.constant 3.200000e+01 : f32
    %265 = vector.broadcast %cst_172 : f32 to vector<8x1xf32>
    %266 = arith.divf %264, %265 : vector<8x1xf32>
    %267 = vector.broadcast %266 : vector<8x1xf32> to vector<8x32xf32>
    %268 = arith.subf %258, %267 : vector<8x32xf32>
    %269 = arith.mulf %268, %268 : vector<8x32xf32>
    %cst_173 = arith.constant dense<0.000000e+00> : vector<8xf32>
    %270 = vector.multi_reduction <add>, %269, %cst_173 [1] : vector<8x32xf32> to vector<8xf32>
    %271 = vector.shape_cast %270 : vector<8xf32> to vector<8x1xf32>
    %cst_174 = arith.constant 3.200000e+01 : f32
    %272 = vector.broadcast %cst_174 : f32 to vector<8x1xf32>
    %273 = arith.divf %271, %272 : vector<8x1xf32>
    %274 = vector.broadcast %266 : vector<8x1xf32> to vector<8x32xf32>
    %275 = arith.subf %258, %274 : vector<8x32xf32>
    %cst_175 = arith.constant 9.99999996E-13 : f32
    %276 = vector.broadcast %cst_175 : f32 to vector<8x1xf32>
    %277 = arith.addf %273, %276 : vector<8x1xf32>
    %278 = math.rsqrt %277 : vector<8x1xf32>
    %279 = vector.broadcast %278 : vector<8x1xf32> to vector<8x32xf32>
    %280 = arith.mulf %275, %279 : vector<8x32xf32>
    %281 = vector.broadcast %260 : vector<1x32xf32> to vector<8x32xf32>
    %282 = arith.mulf %280, %281 : vector<8x32xf32>
    %283 = vector.broadcast %262 : vector<1x32xf32> to vector<8x32xf32>
    %284 = arith.addf %282, %283 : vector<8x32xf32>
    %285 = vector.extract_strided_slice %284 {offsets = [0, 0], sizes = [1, 32], strides = [1, 1]} : vector<8x32xf32> to vector<1x32xf32>
    %c0_176 = arith.constant 0 : index
    %c0_177 = arith.constant 0 : index
    %286 = vector.load %arg22[%c0_176, %c0_177] : memref<32x32xf32, #tpu.memory_space<vmem>>, vector<32x32xf32>
    %cst_178 = arith.constant dense<0.000000e+00> : vector<1x32xf32>
    %287 = tpu.matmul %285, %286, %cst_178 {dimension_numbers = #tpu.dot_dimension_numbers<[1], [0], [0], [1], [0, 0, 1, 1], [], []>} : vector<1x32xf32>, vector<32x32xf32>, vector<1x32xf32> -> vector<1x32xf32>
    %c0_179 = arith.constant 0 : index
    %c0_180 = arith.constant 0 : index
    %288 = vector.load %arg23[%c0_179, %c0_180] : memref<1x32xf32, #tpu.memory_space<vmem>>, vector<1x32xf32>
    %289 = arith.addf %287, %288 : vector<1x32xf32>
    %290 = math.tanh %289 : vector<1x32xf32>
    %c0_181 = arith.constant 0 : index
    %c0_182 = arith.constant 0 : index
    %291 = vector.load %arg24[%c0_181, %c0_182] : memref<32x128xf32, #tpu.memory_space<vmem>>, vector<32x128xf32>
    %cst_183 = arith.constant dense<0.000000e+00> : vector<1x128xf32>
    %292 = tpu.matmul %290, %291, %cst_183 {dimension_numbers = #tpu.dot_dimension_numbers<[1], [0], [0], [1], [0, 0, 1, 1], [], []>} : vector<1x32xf32>, vector<32x128xf32>, vector<1x128xf32> -> vector<1x128xf32>
    %c0_184 = arith.constant 0 : index
    %c0_185 = arith.constant 0 : index
    %293 = vector.load %arg25[%c0_184, %c0_185] : memref<1x128xf32, #tpu.memory_space<vmem>>, vector<1x128xf32>
    %294 = arith.addf %292, %293 : vector<1x128xf32>
    %c0_186 = arith.constant 0 : index
    %c0_187 = arith.constant 0 : index
    %c0_188 = arith.constant 0 : index
    %295 = vector.load %arg26[%c0_186, %c0_187, %c0_188] : memref<1x1x128xf32, #tpu.memory_space<vmem>>, vector<1x1x128xf32>
    %296 = vector.shape_cast %295 : vector<1x1x128xf32> to vector<1x128xf32>
    %297 = vector.shape_cast %294 : vector<1x128xf32> to vector<1x1x128xf32>
    tpu.vector_store %arg26[%c0_186, %c0_187, %c0_188], %297 {strides = array<i32>} : memref<1x1x128xf32, #tpu.memory_space<vmem>>, vector<1x1x128xf32>,
    return
  }
  func.func @transform_0(%arg0: i32) -> (i32, i32, i32) {
    %c0_i32 = arith.constant 0 : i32
    %c0_i32_0 = arith.constant 0 : i32
    %c0_i32_1 = arith.constant 0 : i32
    return %arg0, %c0_i32, %c0_i32_0 : i32, i32, i32
  }
  func.func @transform_1(%arg0: i32) -> (i32, i32) {
    %c0_i32 = arith.constant 0 : i32
    %c0_i32_0 = arith.constant 0 : i32
    %c0_i32_1 = arith.constant 0 : i32
    return %c0_i32, %c0_i32_0 : i32, i32
  }
  func.func @transform_2(%arg0: i32) -> (i32, i32) {
    %c0_i32 = arith.constant 0 : i32
    %c0_i32_0 = arith.constant 0 : i32
    %c0_i32_1 = arith.constant 0 : i32
    return %c0_i32, %c0_i32_0 : i32, i32
  }
  func.func @transform_3(%arg0: i32) -> (i32, i32) {
    %c0_i32 = arith.constant 0 : i32
    %c0_i32_0 = arith.constant 0 : i32
    %c0_i32_1 = arith.constant 0 : i32
    return %c0_i32, %c0_i32_0 : i32, i32
  }
  func.func @transform_4(%arg0: i32) -> (i32, i32) {
    %c0_i32 = arith.constant 0 : i32
    %c0_i32_0 = arith.constant 0 : i32
    %c0_i32_1 = arith.constant 0 : i32
    return %c0_i32, %c0_i32_0 : i32, i32
  }
  func.func @transform_5(%arg0: i32) -> (i32, i32, i32, i32) {
    %c0_i32 = arith.constant 0 : i32
    %c0_i32_0 = arith.constant 0 : i32
    %c0_i32_1 = arith.constant 0 : i32
    %c0_i32_2 = arith.constant 0 : i32
    %c0_i32_3 = arith.constant 0 : i32
    return %c0_i32, %c0_i32_0, %c0_i32_1, %c0_i32_2 : i32, i32, i32, i32
  }
  func.func @transform_6(%arg0: i32) -> (i32, i32, i32, i32) {
    %c0_i32 = arith.constant 0 : i32
    %c0_i32_0 = arith.constant 0 : i32
    %c0_i32_1 = arith.constant 0 : i32
    %c0_i32_2 = arith.constant 0 : i32
    %c0_i32_3 = arith.constant 0 : i32
    return %c0_i32, %c0_i32_0, %c0_i32_1, %c0_i32_2 : i32, i32, i32, i32
  }
  func.func @transform_7(%arg0: i32) -> (i32, i32, i32, i32) {
    %c0_i32 = arith.constant 0 : i32
    %c0_i32_0 = arith.constant 0 : i32
    %c0_i32_1 = arith.constant 0 : i32
    %c0_i32_2 = arith.constant 0 : i32
    %c0_i32_3 = arith.constant 0 : i32
    return %c0_i32, %c0_i32_0, %c0_i32_1, %c0_i32_2 : i32, i32, i32, i32
  }
  func.func @transform_8(%arg0: i32) -> (i32, i32, i32, i32) {
    %c0_i32 = arith.constant 0 : i32
    %c0_i32_0 = arith.constant 0 : i32
    %c0_i32_1 = arith.constant 0 : i32
    %c0_i32_2 = arith.constant 0 : i32
    %c0_i32_3 = arith.constant 0 : i32
    return %c0_i32, %c0_i32_0, %c0_i32_1, %c0_i32_2 : i32, i32, i32, i32
  }
  func.func @transform_9(%arg0: i32) -> (i32, i32, i32, i32) {
    %c0_i32 = arith.constant 0 : i32
    %c0_i32_0 = arith.constant 0 : i32
    %c0_i32_1 = arith.constant 0 : i32
    %c0_i32_2 = arith.constant 0 : i32
    %c0_i32_3 = arith.constant 0 : i32
    return %c0_i32, %c0_i32_0, %c0_i32_1, %c0_i32_2 : i32, i32, i32, i32
  }
  func.func @transform_10(%arg0: i32) -> (i32, i32, i32, i32) {
    %c0_i32 = arith.constant 0 : i32
    %c0_i32_0 = arith.constant 0 : i32
    %c0_i32_1 = arith.constant 0 : i32
    %c0_i32_2 = arith.constant 0 : i32
    %c0_i32_3 = arith.constant 0 : i32
    return %c0_i32, %c0_i32_0, %c0_i32_1, %c0_i32_2 : i32, i32, i32, i32
  }
  func.func @transform_11(%arg0: i32) -> (i32, i32, i32, i32) {
    %c0_i32 = arith.constant 0 : i32
    %c0_i32_0 = arith.constant 0 : i32
    %c0_i32_1 = arith.constant 0 : i32
    %c0_i32_2 = arith.constant 0 : i32
    %c0_i32_3 = arith.constant 0 : i32
    return %c0_i32, %c0_i32_0, %c0_i32_1, %c0_i32_2 : i32, i32, i32, i32
  }
  func.func @transform_12(%arg0: i32) -> (i32, i32, i32) {
    %c0_i32 = arith.constant 0 : i32
    %c0_i32_0 = arith.constant 0 : i32
    %c0_i32_1 = arith.constant 0 : i32
    %c0_i32_2 = arith.constant 0 : i32
    return %c0_i32, %c0_i32_0, %c0_i32_1 : i32, i32, i32
  }
  func.func @transform_13(%arg0: i32) -> (i32, i32, i32) {
    %c0_i32 = arith.constant 0 : i32
    %c0_i32_0 = arith.constant 0 : i32
    %c0_i32_1 = arith.constant 0 : i32
    %c0_i32_2 = arith.constant 0 : i32
    return %c0_i32, %c0_i32_0, %c0_i32_1 : i32, i32, i32
  }
  func.func @transform_14(%arg0: i32) -> (i32, i32, i32) {
    %c0_i32 = arith.constant 0 : i32
    %c0_i32_0 = arith.constant 0 : i32
    %c0_i32_1 = arith.constant 0 : i32
    %c0_i32_2 = arith.constant 0 : i32
    return %c0_i32, %c0_i32_0, %c0_i32_1 : i32, i32, i32
  }
  func.func @transform_15(%arg0: i32) -> (i32, i32, i32) {
    %c0_i32 = arith.constant 0 : i32
    %c0_i32_0 = arith.constant 0 : i32
    %c0_i32_1 = arith.constant 0 : i32
    %c0_i32_2 = arith.constant 0 : i32
    return %c0_i32, %c0_i32_0, %c0_i32_1 : i32, i32, i32
  }
  func.func @transform_16(%arg0: i32) -> (i32, i32, i32) {
    %c0_i32 = arith.constant 0 : i32
    %c0_i32_0 = arith.constant 0 : i32
    %c0_i32_1 = arith.constant 0 : i32
    %c0_i32_2 = arith.constant 0 : i32
    return %c0_i32, %c0_i32_0, %c0_i32_1 : i32, i32, i32
  }
  func.func @transform_17(%arg0: i32) -> (i32, i32, i32) {
    %c0_i32 = arith.constant 0 : i32
    %c0_i32_0 = arith.constant 0 : i32
    %c0_i32_1 = arith.constant 0 : i32
    %c0_i32_2 = arith.constant 0 : i32
    return %c0_i32, %c0_i32_0, %c0_i32_1 : i32, i32, i32
  }
  func.func @transform_18(%arg0: i32) -> (i32, i32, i32) {
    %c0_i32 = arith.constant 0 : i32
    %c0_i32_0 = arith.constant 0 : i32
    %c0_i32_1 = arith.constant 0 : i32
    %c0_i32_2 = arith.constant 0 : i32
    return %c0_i32, %c0_i32_0, %c0_i32_1 : i32, i32, i32
  }
  func.func @transform_19(%arg0: i32) -> (i32, i32, i32) {
    %c0_i32 = arith.constant 0 : i32
    %c0_i32_0 = arith.constant 0 : i32
    %c0_i32_1 = arith.constant 0 : i32
    %c0_i32_2 = arith.constant 0 : i32
    return %c0_i32, %c0_i32_0, %c0_i32_1 : i32, i32, i32
  }
  func.func @transform_20(%arg0: i32) -> (i32, i32, i32) {
    %c0_i32 = arith.constant 0 : i32
    %c0_i32_0 = arith.constant 0 : i32
    %c0_i32_1 = arith.constant 0 : i32
    %c0_i32_2 = arith.constant 0 : i32
    return %c0_i32, %c0_i32_0, %c0_i32_1 : i32, i32, i32
  }
  func.func @transform_21(%arg0: i32) -> (i32, i32) {
    %c0_i32 = arith.constant 0 : i32
    %c0_i32_0 = arith.constant 0 : i32
    %c0_i32_1 = arith.constant 0 : i32
    return %c0_i32, %c0_i32_0 : i32, i32
  }
  func.func @transform_22(%arg0: i32) -> (i32, i32) {
    %c0_i32 = arith.constant 0 : i32
    %c0_i32_0 = arith.constant 0 : i32
    %c0_i32_1 = arith.constant 0 : i32
    return %c0_i32, %c0_i32_0 : i32, i32
  }
  func.func @transform_23(%arg0: i32) -> (i32, i32) {
    %c0_i32 = arith.constant 0 : i32
    %c0_i32_0 = arith.constant 0 : i32
    %c0_i32_1 = arith.constant 0 : i32
    return %c0_i32, %c0_i32_0 : i32, i32
  }
  func.func @transform_24(%arg0: i32) -> (i32, i32) {
    %c0_i32 = arith.constant 0 : i32
    %c0_i32_0 = arith.constant 0 : i32
    %c0_i32_1 = arith.constant 0 : i32
    return %c0_i32, %c0_i32_0 : i32, i32
  }
  func.func @transform_25(%arg0: i32) -> (i32, i32, i32) {
    %c0_i32 = arith.constant 0 : i32
    %c0_i32_0 = arith.constant 0 : i32
    %c0_i32_1 = arith.constant 0 : i32
    return %arg0, %c0_i32, %c0_i32_0 : i32, i32, i32
  }
}

</mosaic_0001>

<bundles_post_ra>
// kernel: _lambda_.1
= control target key start
LH: loop header
LB: loop body
LE: loop exit
PB: predicated region body
PF: predicated region fallthrough
CT: control target
= control target key end

     0   :  { %s4072_s0 = inlined_call_operand.vmem [shape: s32[2,8,1], index: 0, kind: input, shape index: {}]   ;;  %s4073_s1 = inlined_call_operand.vmem [shape: f32[100,32], index: 1, kind: input, shape index: {}]   ;;  %s4074_s2 = inlined_call_operand.vmem [shape: f32[8,32], index: 2, kind: input, shape index: {}]   ;;  %s4075_s3 = inlined_call_operand.vmem [shape: f32[1,32], index: 3, kind: input, shape index: {}]   ;;  %s4076_s4 = inlined_call_operand.vmem [shape: f32[1,32], index: 4, kind: input, shape index: {}]   ;;  %s4077_s5 = inlined_call_operand.vmem [shape: f32[2,4,32,8], index: 5, kind: input, shape index: {}]   ;;  %s4078_s6 = inlined_call_operand.vmem [shape: f32[2,4,1,8], index: 6, kind: input, shape index: {}]   ;;  %s4079_s7 = inlined_call_operand.vmem [shape: f32[2,4,32,8], index: 7, kind: input, shape index: {}]   ;;  %s4080_s8 = inlined_call_operand.vmem [shape: f32[2,4,1,8], index: 8, kind: input, shape index: {}]   ;;  %s4081_s9 = inlined_call_operand.vmem [shape: f32[2,4,32,8], index: 9, kind: input, shape index: {}]   ;;  %s4082_s10 = inlined_call_operand.vmem [shape: f32[2,4,1,8], index: 10, kind: input, shape index: {}]   ;;  %s4083_s11 = inlined_call_operand.vmem [shape: f32[2,4,8,32], index: 11, kind: input, shape index: {}]   ;;  %s4084_s12 = inlined_call_operand.vmem [shape: f32[2,1,32], index: 12, kind: input, shape index: {}]   ;;  %s4085_s13 = inlined_call_operand.vmem [shape: f32[2,1,32], index: 13, kind: input, shape index: {}]   ;;  %s4086_s14 = inlined_call_operand.vmem [shape: f32[2,1,32], index: 14, kind: input, shape index: {}]   ;;  %s4087_s15 = inlined_call_operand.vmem [shape: f32[2,32,64], index: 15, kind: input, shape index: {}]   ;;  %s4088_s16 = inlined_call_operand.vmem [shape: f32[2,1,64], index: 16, kind: input, shape index: {}]   ;;  %s4089_s17 = inlined_call_operand.vmem [shape: f32[2,64,32], index: 17, kind: input, shape index: {}]   ;;  %s4090_s18 = inlined_call_operand.vmem [shape: f32[2,1,32], index: 18, kind: input, shape index: {}]   ;;  %s4091_s19 = inlined_call_operand.vmem [shape: f32[2,1,32], index: 19, kind: input, shape index: {}]   ;;  %s4092_s20 = inlined_call_operand.vmem [shape: f32[2,1,32], index: 20, kind: input, shape index: {}]   ;;  %s4093_s21 = inlined_call_operand.vmem [shape: f32[32,32], index: 21, kind: input, shape index: {}]   ;;  %s4094_s22 = inlined_call_operand.vmem [shape: f32[1,32], index: 22, kind: input, shape index: {}]   ;;  %s4095_s23 = inlined_call_operand.vmem [shape: f32[32,128], index: 23, kind: input, shape index: {}]   ;;  %s4096_s24 = inlined_call_operand.vmem [shape: f32[1,128], index: 24, kind: input, shape index: {}]   ;;  %s4097_s25 = inlined_call_operand.hbm [shape: f32[2,1,128], index: 25, kind: output, shape index: {}]  }
   0x1   :  { %4115 = sst [smem:[#allocation12_spill]] %s4072_s0 }
   0x2   :  { %4116 = sst [smem:[#allocation13_spill]] %s4073_s1 }
   0x3   :  { %4117 = sst [smem:[#allocation14_spill]] %s4074_s2 }
   0x4   :  { %4118 = sst [smem:[#allocation15_spill]] %s4075_s3 }
   0x5   :  { %4119 = sst [smem:[#allocation16_spill]] %s4076_s4 }
   0x6   :  { %4120 = sst [smem:[#allocation17_spill]] %s4077_s5 }
   0x7   :  { %4121 = sst [smem:[#allocation18_spill]] %s4078_s6 }
   0x8   :  { %4122 = sst [smem:[#allocation19_spill]] %s4079_s7 }
   0x9   :  { %4123 = sst [smem:[#allocation20_spill]] %s4080_s8 }
   0xa   :  { %4124 = sst [smem:[#allocation21_spill]] %s4081_s9 }
   0xb   :  { %4125 = sst [smem:[#allocation22_spill]] %s4082_s10 }
   0xc   :  { %4126 = sst [smem:[#allocation23_spill]] %s4083_s11 }
   0xd   :  { %4127 = sst [smem:[#allocation24_spill]] %s4084_s12 }
   0xe   :  { %4128 = sst [smem:[#allocation25_spill]] %s4094_s22 }
   0xf   :  { %4129 = sst [smem:[#allocation26_spill]] %s4096_s24 }
  0x10   :  { %4130 = sst [smem:[#allocation27_spill]] %s4097_s25 }
  0x11   :  { %30 = vsyncpa [#allocation3], 0 }
  0x12   :  { %32 = vsyncpa [#allocation3 + $0x1], 0  ;;  %s3247_s29 = smov 0   ;;  %s3249_s2 = smov 0  }
  0x13   :  { %s3251_s6 = smov 0   ;;  %s3253_s30 = smov 0  }
  0x14 LB: > { %4131 = sst [smem:[#allocation5_spill]] %s3100_s29  ;;  %s3268_s7 = sadd.s32 4294967295, %s3112_s30   ;;  %s3112_s30 = sphi %s3253_s30, %s4162_s30   ;;  %s3108_s6 = sphi %s3251_s6, %s4164_s6   ;;  %s3104_s2 = sphi %s3249_s2, %s4166_s2   ;;  %s3100_s29 = sphi %s3247_s29, %s4165_s29  }
  0x15   : > { %4132 = sst [smem:[#allocation6_spill]] %s3108_s6  ;;  %s2762_s3 = sadd.s32 4294967294, %s3112_s30  }
  0x16   : > { %4133 = sst [smem:[#allocation7_spill]] %s3112_s30  ;;  %s3272_s26 = sadd.s32 1, %s3112_s30  }
  0x17   : > { %4134 = sst [smem:[#allocation8_spill]] %s3272_s26  ;;  %s575_s1 = sadd.s32 1, %s3108_s6 }
  0x18   : > { %s572_s8 = ssub.s32 %s3112_s30, %s3272_s26  ;;  %p585_p0 = scmp.ne.s32.totalorder %s3108_s6, %s3104_s2 }
  0x19   : > { %p573_p1 = scmp.eq.s32.totalorder %s572_s8, 0  ;;  %p586_p2 = scmp.eq.s32.totalorder %s3268_s7, 1 }
  0x1a   : > { %p591_p3 = scmp.ne.s32.totalorder %s3104_s2, %s3100_s29  ;;  %p592_p4 = scmp.eq.s32.totalorder %s2762_s3, 1 }
  0x1b   : > { %s3283_s27 = scalar_select %p573_p1, %s3108_s6, %s575_s1  }
  0x1c   : > { %p3285_p5 = por %p586_p2, %p585_p0  ;;  %p3289_p6 = por %p592_p4, %p591_p3 }
  0x1d   : > { %4135 = sst [smem:[#allocation9_spill]] %s3283_s27  ;;  %p2765_p7 = scmp.ge.s32.totalorder %s3112_s30, 1 }
  0x1e   : > { %s4136_s4 = scalar_select %p3285_p5, 1, 0 }
  0x1f   : > { %s4138_s28 = scalar_select %p3289_p6, 1, 0 }
  0x20   : > { %4137 = sst [smem:[#allocation10_spill]] %s4136_s4  ;;  %p689_p8 = scmp.lt.s32.totalorder %s3112_s30, 3 }
  0x21   : > { %4139 = sst [smem:[#allocation11_spill]] %s4138_s28 }
  0x22   : > { %p690_p9 = pnand %p2765_p7, %p689_p8 }
  0x23   : > { %p755_p10 = scmp.lt.s32.totalorder (!%p690_p9), %s3268_s7, 1  ;;  %s4140_s0 = sld [smem:[#allocation13_spill]] (!%p690_p9) }
  0x24   : > { %693 = sbr.rel (%p690_p9) target bundleno = 4118 (0x1016), region = 120  ;;  %s4141_s30 = sld [smem:[#allocation12_spill]] (!%p690_p9) }
  0x25   : > { %s4142_s27 = sld [smem:[#allocation14_spill]] (!%p690_p9)  ;;  %s753_s22 = sand.u32 (!%p690_p9), 1, %s3104_s2  }
  0x26   : > { %s4145_s25 = sld [smem:[#allocation19_spill]] (!%p690_p9)  ;;  %s2695_s26 = scalar_lea.sflag (!%p690_p9), [#allocation3], %s753_s22 }
  0x27   : > { %s4146_s28 = sld [smem:[#allocation15_spill]] (!%p690_p9) }
  0x28   : > { %s4149_s29 = sld [smem:[#allocation20_spill]] (!%p690_p9) }
  0x29   : > { %v780_v0 = vld [vmem:[%s4140_s0 + $0x60] sm:$0xf]  ;;  %vm786_vm0 = vcmask 1043456   ;;  %v779_v1 = vld [vmem:[%s4140_s0 + $0x58] sm:$0xff]  ;;  %v3114_v2 = vmov 0   ;;  %s756_s8 = scalar_select %p755_p10, %s3268_s7, 1  ;;  %v760_v15 = vlaneseq }
  0x2a   : > { %2959 = vset.pattern.permute.xlu0 %v3114_v2  ;;  %2768 = vmatpush.msk.msra.mxu0 %vm786_vm0, %v780_v0  ;;  %v778_v3 = vld [vmem:[%s4140_s0 + $0x50] sm:$0xff]  ;;  %v777_v4 = vld [vmem:[%s4140_s0 + $0x48] sm:$0xff]  ;;  %v776_v5 = vld [vmem:[%s4140_s0 + $0x40] sm:$0xff]  ;;  %vm782_vm1 = vcmask 818176   ;;  %v3115_v18 = vmov 0.0   ;;  %vm812_vm3 = vcmask 261120  }
  0x2b   : > { %s2766_s9 = sshll.u32 %s756_s8, 3  ;;  %v775_v7 = vld [vmem:[%s4140_s0 + $0x38] sm:$0xff]  ;;  %v774_v8 = vld [vmem:[%s4140_s0 + $0x30] sm:$0xff]  ;;  %v773_v9 = vld [vmem:[%s4140_s0 + $0x28] sm:$0xff]  ;;  %v761_v16 = vand.u32 127, %v760_v15  ;;  %v3116_v24 = vmov 32.0  }
  0x2c   : > { %794 = vmatpush.msra.mxu0 %v779_v1  ;;  %s758_s24 = scalar_lea.vmem %s4141_s30, %s2766_s9  ;;  %v772_v10 = vld [vmem:[%s4140_s0 + $0x20] sm:$0xff]  ;;  %v771_v11 = vld [vmem:[%s4140_s0 + $0x18] sm:$0xff]  ;;  %v770_v12 = vld [vmem:[%s4140_s0 + $0x10] sm:$0xff]  ;;  %3000 = vrcp.f32 %v3116_v24  ;;  %s4143_s30 = sld [smem:[#allocation17_spill]]  ;;  %vm1189_vm8 = vcmask 64512  }
  0x2d   : > { %v759_v6 = vld [vmem:[%s758_s24] sm:$0xff]  ;;  %v769_v13 = vld [vmem:[%s4140_s0 + $0x8] sm:$0xff]  ;;  %v968_v49 = vld [vmem:[%s4145_s25 + $0x18] sm:$0xff]  ;;  %s4147_s8 = sld [smem:[#allocation16_spill]] }
  0x2e   : > { %795 = vmatpush.msra.mxu0 %v778_v3  ;;  %763 = vperm.xlu0 %2959, %v759_v6   ;;  %v768_v14 = vld [vmem:[%s4140_s0] sm:$0xff]  ;;  %v972_v50 = vld [vmem:[%s4145_s25 + $0x38] sm:$0xff]  ;;  %v967_v52 = vld [vmem:[%s4145_s25 + $0x10] sm:$0xff]  ;;  %s4151_s1 = sld [smem:[#allocation18_spill]] }
  0x2f   : > { %v781_v20 = vld [vmem:[%s4142_s27] sm:$0xff]  ;;  %v971_v53 = vld [vmem:[%s4145_s25 + $0x30] sm:$0xff]  ;;  %v966_v56 = vld [vmem:[%s4145_s25 + $0x8] sm:$0xff]  ;;  %s4148_s27 = sld [smem:[#allocation21_spill]] }
  0x30   : > { %796 = vmatpush.msra.mxu0 %v777_v4  ;;  %v970_v58 = vld [vmem:[%s4145_s25 + $0x28] sm:$0xff]  ;;  %v965_v60 = vld [vmem:[%s4145_s25] sm:$0xff]  ;;  %v979_v15 = vld [vmem:[%s4145_s25 + $0x70] sm:$0xff]  ;;  %s4152_s10 = sld [smem:[#allocation22_spill]] }
  0x31   : > { %v969_v62 = vld [vmem:[%s4145_s25 + $0x20] sm:$0xff]  ;;  %s4153_s11 = sld [smem:[#allocation23_spill]] }
  0x32   : > { %797 = vmatpush.msra.mxu0 %v776_v5  ;;  %v3001_v25 = vpop.eup %3000  ;;  %s4144_s24 = smov %s4143_s30  ;;  %v853_v36 = vld [vmem:[%s4143_s30 + $0x18] sm:$0xff]  ;;  %v2960_v5 = vld [vmem:[%s4146_s28] ss:$0 sm:$0xff]  ;;  %s4150_s28 = smov %s4149_s29 }
  0x33   : > { %v817_v26 = vmul.f32 32.0, %v3001_v25  ;;  %vm821_vm4 = vweird.f32 %v3001_v25  ;;  %v857_v37 = vld [vmem:[%s4144_s24 + $0x38] sm:$0xff]  ;;  %897 = vmatpush.msra.mxu1 %v853_v36  ;;  %v852_v39 = vld [vmem:[%s4144_s24 + $0x10] sm:$0xff]  ;;  %v851_v42 = vld [vmem:[%s4144_s24 + $0x8] sm:$0xff]  ;;  %s4154_s12 = sld [smem:[#allocation24_spill]] }
  0x34   : > { %798 = vmatpush.msra.mxu0 %v775_v7  ;;  %v861_v38 = vld [vmem:[%s4144_s24 + $0x58] sm:$0xff]  ;;  %917 = vmatpush.msra.mxu2 %v857_v37  ;;  %v856_v40 = vld [vmem:[%s4144_s24 + $0x30] sm:$0xff]  ;;  %v855_v43 = vld [vmem:[%s4144_s24 + $0x28] sm:$0xff]  ;;  %s4156_s4 = sld [smem:[#allocation27_spill]] }
  0x35   : > { %v818_v27 = vsub.f32 1.0, %v817_v26  ;;  %937 = vmatpush.msra.mxu3 %v861_v38  ;;  %v860_v41 = vld [vmem:[%s4144_s24 + $0x50] sm:$0xff]  ;;  %898 = vmatpush.msra.mxu1 %v852_v39  ;;  %v859_v44 = vld [vmem:[%s4144_s24 + $0x48] sm:$0xff]  ;;  %v850_v45 = vld [vmem:[%s4144_s24] sm:$0xff] }
  0x36   : > { %799 = vmatpush.msra.mxu0 %v774_v8  ;;  %918 = vmatpush.msra.mxu2 %v856_v40  ;;  %v854_v46 = vld [vmem:[%s4144_s24 + $0x20] sm:$0xff]  ;;  %v865_v48 = vld [vmem:[%s4144_s24 + $0x78] sm:$0xff]  ;;  %v864_v51 = vld [vmem:[%s4144_s24 + $0x70] sm:$0xff] }
  0x37   : > { %v819_v28 = vmul.f32 %v3001_v25, %v818_v27  ;;  %938 = vmatpush.msra.mxu3 %v860_v41  ;;  %899 = vmatpush.msra.mxu1 %v851_v42  ;;  %v858_v47 = vld [vmem:[%s4144_s24 + $0x40] sm:$0xff]  ;;  %v863_v55 = vld [vmem:[%s4144_s24 + $0x68] sm:$0xff]  ;;  %v1088_v24 = vld [vmem:[%s4148_s27 + $0x58] sm:$0xff] }
  0x38   : > { %800 = vmatpush.msra.mxu0 %v773_v9  ;;  %919 = vmatpush.msra.mxu2 %v855_v43  ;;  %v862_v59 = vld [vmem:[%s4144_s24 + $0x60] sm:$0xff]  ;;  %v1083_v26 = vld [vmem:[%s4148_s27 + $0x30] sm:$0xff] }
  0x39   : > { %v820_v29 = vadd.f32 %v3001_v25, %v819_v28  ;;  %939 = vmatpush.msra.mxu3 %v859_v44  ;;  %900 = vmatpush.msra.mxu1 %v850_v45  ;;  %v2961_v7 = vld [vmem:[%s4147_s8] ss:$0 sm:$0xff]  ;;  %v1087_v27 = vld [vmem:[%s4148_s27 + $0x50] sm:$0xff]  ;;  %v2967_v41 = vld [vmem:[%s4150_s28 + $0x1] ss:$0 sm:$0xff] }
  0x3a   : > { %801 = vmatpush.msra.mxu0 %v772_v10  ;;  %920 = vmatpush.msra.mxu2 %v854_v46  ;;  %v1091_v28 = vld [vmem:[%s4148_s27 + $0x70] sm:$0xff]  ;;  %v2966_v40 = vld [vmem:[%s4149_s29] ss:$0 sm:$0xff]  ;;  %v2968_v42 = vld [vmem:[%s4150_s28 + $0x2] ss:$0 sm:$0xff]  ;;  %s4155_s29 = sld [smem:[#allocation25_spill]]  ;;  %s2703_s9 = scalar_lea.hbm %s4156_s4, %s3268_s7 }
  0x3b   : > { %v3343_v30 = vsel %vm821_vm4, %v3001_v25, %v820_v29  ;;  %940 = vmatpush.msra.mxu3 %v858_v47  ;;  %957 = vmatpush.msrb.mxu1 %v865_v48  ;;  %v1092_v25 = vld [vmem:[%s4148_s27 + $0x78] sm:$0xff]  ;;  %v1082_v29 = vld [vmem:[%s4148_s27 + $0x28] sm:$0xff]  ;;  %v2962_v43 = vld [vmem:[%s4151_s1] ss:$0 sm:$0xff]  ;;  %s2707_s6 = sshll.u32 %s2703_s9, 4  ;;  %s2708_s6 = int_to_ptr.hbm [resolvable:$true] %s2707_s6 }
  0x3c   : > { %802 = vmatpush.msra.mxu0 %v771_v11  ;;  %1009 = vmatpush.msrb.mxu2 %v968_v49  ;;  %v976_v11 = vld [vmem:[%s4145_s25 + $0x58] sm:$0xff]  ;;  %v2963_v45 = vld [vmem:[%s4151_s1 + $0x1] ss:$0 sm:$0xff]  ;;  %v2964_v48 = vld [vmem:[%s4151_s1 + $0x2] ss:$0 sm:$0xff] }
  0x3d   : > { %1029 = vmatpush.msrb.mxu3 %v972_v50  ;;  %958 = vmatpush.msrb.mxu1 %v864_v51 }
  0x3e   : > { %803 = vmatpush.msra.mxu0 %v770_v12  ;;  %1010 = vmatpush.msrb.mxu2 %v967_v52  ;;  %v980_v12 = vld [vmem:[%s4145_s25 + $0x78] sm:$0xff] }
  0x3f   : > { %1030 = vmatpush.msrb.mxu3 %v971_v53  ;;  %959 = vmatpush.msrb.mxu1 %v863_v55 }
  0x40   : > { %804 = vmatpush.msra.mxu0 %v769_v13  ;;  %1011 = vmatpush.msrb.mxu2 %v966_v56  ;;  %v1080_v13 = vld [vmem:[%s4148_s27 + $0x18] sm:$0xff]  ;;  %v2970_v56 = vld [vmem:[%s4152_s10] ss:$0 sm:$0xff] }
  0x41   : > { %1031 = vmatpush.msrb.mxu3 %v970_v58  ;;  %960 = vmatpush.msrb.mxu1 %v862_v59  ;;  %v2965_v58 = vld [vmem:[%s4151_s1 + $0x3] ss:$0 sm:$0xff] }
  0x42   : > { %805 = vmatpush.msra.mxu0 %v768_v14  ;;  %1012 = vmatpush.msrb.mxu2 %v965_v60  ;;  %v975_v14 = vld [vmem:[%s4145_s25 + $0x50] sm:$0xff] }
  0x43   : > { %1032 = vmatpush.msrb.mxu3 %v969_v62 }
  0xa0   : > { %v764_v17 = vpop.permute.xlu0 %763 }
  0xa1   : > { %vm765_vm2 = vcmp.eq.s32.totalorder %v764_v17, %v761_v16  ;;  %v1079_v16 = vld [vmem:[%s4148_s27 + $0x10] sm:$0xff]  ;;  %v974_v17 = vld [vmem:[%s4145_s25 + $0x48] sm:$0xff] }
  0xa2   : > { %v2767_v19 = vsel %vm765_vm2, 1.0, %v3115_v18  ;;  %v978_v18 = vld [vmem:[%s4145_s25 + $0x68] sm:$0xff] }
  0xa3   : > { %2769 = vmatmul.msk.f32.vlgmr.msra.gmra.mxu0 %vm782_vm1, %v2767_v19  ;;  %v1078_v19 = vld [vmem:[%s4148_s27 + $0x8] sm:$0xff] }
 0x120   : > { %v807_v21 = vpop.f32.mrf.mxu0 }
 0x121   : > { %v808_v22 = vadd.f32 %v807_v21, %v781_v20  ;;  %v973_v20 = vld [vmem:[%s4145_s25 + $0x40] sm:$0xff] }
 0x122   : > { %v977_v21 = vld [vmem:[%s4145_s25 + $0x60] sm:$0xff] }
 0x123   : > { %v813_v23 = vsel %vm812_vm3, %v808_v22, 0.0 }
 0x124   : > { %814 = vadd.xlane.f32.xlu0 %v813_v23  ;;  %v1084_v23 = vld [vmem:[%s4148_s27 + $0x38] sm:$0xff] }
 0x197   : > { %v815_v31 = vpop.xlane.xlu0 %814 }
 0x198   : > { %v823_v32 = vmul.f32 %v3343_v30, %v815_v31  ;;  %v1086_v31 = vld [vmem:[%s4148_s27 + $0x48] sm:$0xff] }
 0x19a   : > { %v3346_v33 = vsub.f32 %v808_v22, %v823_v32  ;;  %v1077_v22 = vld [vmem:[%s4148_s27] sm:$0xff]  ;;  %v1090_v32 = vld [vmem:[%s4148_s27 + $0x68] sm:$0xff] }
 0x19c   : > { %v825_v34 = vmul.f32 %v3346_v33, %v3346_v33 }
 0x19e   : > { %v826_v35 = vsel %vm812_vm3, %v825_v34, 0.0  ;;  %v1085_v34 = vld [vmem:[%s4148_s27 + $0x40] sm:$0xff] }
 0x19f   : > { %827 = vadd.xlane.f32.xlu1 %v826_v35  ;;  %v1089_v35 = vld [vmem:[%s4148_s27 + $0x60] sm:$0xff] }
 0x212   : > { %v828_v54 = vpop.xlane.xlu1 %827 }
 0x213   : > { %v829_v57 = vmul.f32 %v828_v54, %v3343_v30  ;;  %v2969_v54 = vld [vmem:[%s4150_s28 + $0x3] ss:$0 sm:$0xff] }
 0x215   : > { %v830_v61 = vadd.f32 1e-12, %v829_v57  ;;  %v2971_v57 = vld [vmem:[%s4152_s10 + $0x1] ss:$0 sm:$0xff] }
 0x217   : > { %3002 = vrsqrt.f32 %v830_v61  ;;  %vm837_vm6 = vweird.f32 %v830_v61 }
 0x21d   : > { %v3003_v63 = vpop.eup %3002 }
 0x21e   : > { %v832_v0 = vmul.f32 %v3003_v63, %v830_v61  ;;  %vm838_vm5 = vweird.f32 %v3003_v63 }
 0x21f   : > { %vm839_vm7 = vmor %vm837_vm6, %vm838_vm5 }
 0x220   : > { %v833_v1 = vmul.f32 %v3003_v63, %v832_v0 }
 0x222   : > { %v834_v2 = vmul.f32 0.5, %v833_v1 }
 0x224   : > { %v835_v3 = vsub.f32 1.5, %v834_v2  ;;  %v2972_v2 = vld [vmem:[%s4152_s10 + $0x2] ss:$0 sm:$0xff] }
 0x226   : > { %v836_v4 = vmul.f32 %v3003_v63, %v835_v3  ;;  %v2973_v3 = vld [vmem:[%s4152_s10 + $0x3] ss:$0 sm:$0xff] }
 0x228   : > { %v840_v6 = vsel %vm839_vm7, %v3003_v63, %v836_v4 }
 0x229   : > { %v841_v8 = vmul.f32 %v840_v6, %v3346_v33  ;;  %v1081_v33 = vld [vmem:[%s4148_s27 + $0x20] sm:$0xff] }
 0x22b   : > { %v845_v9 = vmul.f32 %v2960_v5, %v841_v8 }
 0x22d   : > { %v3431_v10 = vadd.f32 %v2961_v7, %v845_v9 }
 0x22f   : > { %2770 = vmatmul.msk.f32.vlgmr.msra.gmra.mxu1 %vm812_vm3, %v3431_v10  ;;  %2771 = vmatmul.msk.f32.vlgmr.msra.gmra.mxu2 %vm812_vm3, %v3431_v10 }
 0x230   : > { %2772 = vmatmul.msk.f32.vlgmr.msra.gmra.mxu3 %vm812_vm3, %v3431_v10  ;;  %1049 = vmatpush.msra.mxu1 %v976_v11 }
 0x231   : > { %1069 = vmatpush.msra.mxu2 %v980_v12  ;;  %1121 = vmatpush.msra.mxu3 %v1080_v13 }
 0x232   : > { %1050 = vmatpush.msra.mxu1 %v975_v14 }
 0x233   : > { %1070 = vmatpush.msra.mxu2 %v979_v15  ;;  %1122 = vmatpush.msra.mxu3 %v1079_v16 }
 0x234   : > { %1051 = vmatpush.msra.mxu1 %v974_v17 }
 0x235   : > { %1071 = vmatpush.msra.mxu2 %v978_v18  ;;  %1123 = vmatpush.msra.mxu3 %v1078_v19 }
 0x236   : > { %1052 = vmatpush.msra.mxu1 %v973_v20 }
 0x237   : > { %2773 = vmatmul.msk.f32.vlgmr.msrb.gmra.mxu1 %vm812_vm3, %v3431_v10  ;;  %2774 = vmatmul.msk.f32.vlgmr.msrb.gmra.mxu2 %vm812_vm3, %v3431_v10 }
 0x238   : > { %2775 = vmatmul.msk.f32.vlgmr.msrb.gmra.mxu3 %vm812_vm3, %v3431_v10  ;;  %1072 = vmatpush.msra.mxu2 %v977_v21 }
 0x239   : > { %1124 = vmatpush.msra.mxu3 %v1077_v22  ;;  %1141 = vmatpush.msrb.mxu1 %v1084_v23 }
 0x23a   : > { %1161 = vmatpush.msrb.mxu2 %v1088_v24 }
 0x23b   : > { %1181 = vmatpush.msrb.mxu3 %v1092_v25  ;;  %1142 = vmatpush.msrb.mxu1 %v1083_v26 }
 0x23c   : > { %1162 = vmatpush.msrb.mxu2 %v1087_v27 }
 0x23d   : > { %1182 = vmatpush.msrb.mxu3 %v1091_v28  ;;  %1143 = vmatpush.msrb.mxu1 %v1082_v29 }
 0x23e   : > { %1163 = vmatpush.msrb.mxu2 %v1086_v31 }
 0x23f   : > { %1183 = vmatpush.msrb.mxu3 %v1090_v32  ;;  %2776 = vmatmul.msk.f32.vlgmr.msra.gmra.mxu1 %vm812_vm3, %v3431_v10 }
 0x240   : > { %2777 = vmatmul.msk.f32.vlgmr.msra.gmra.mxu2 %vm812_vm3, %v3431_v10  ;;  %2778 = vmatmul.msk.f32.vlgmr.msra.gmra.mxu3 %vm812_vm3, %v3431_v10 }
 0x241   : > { %1144 = vmatpush.msrb.mxu1 %v1081_v33  ;;  %1164 = vmatpush.msrb.mxu2 %v1085_v34 }
 0x242   : > { %1184 = vmatpush.msrb.mxu3 %v1089_v35 }
 0x247   : > { %2779 = vmatmul.msk.f32.vlgmr.msrb.gmra.mxu1 %vm812_vm3, %v3431_v10 }
 0x248   : > { %2780 = vmatmul.msk.f32.vlgmr.msrb.gmra.mxu2 %vm812_vm3, %v3431_v10  ;;  %2781 = vmatmul.msk.f32.vlgmr.msrb.gmra.mxu3 %vm812_vm3, %v3431_v10 }
 0x2ac   : > { %v902_v36 = vpop.f32.mrf.mxu1 }
 0x2ad   : > { %v903_v52 = vadd.f32 %v2962_v43, %v902_v36 }
 0x2b2   : > { %v922_v37 = vpop.f32.mrf.mxu2 }
 0x2b3   : > { %v942_v38 = vpop.f32.mrf.mxu3  ;;  %v923_v53 = vadd.f32 %v2963_v45, %v922_v37 }
 0x2b4   : > { %v962_v39 = vpop.f32.mrf.mxu1  ;;  %v943_v55 = vadd.f32 %v2964_v48, %v942_v38 }
 0x2b5   : > { %v963_v1 = vadd.f32 %v2965_v58, %v962_v39 }
 0x2ba   : > { %v1014_v44 = vpop.f32.mrf.mxu2 }
 0x2bb   : > { %v1015_v46 = vadd.f32 %v2966_v40, %v1014_v44  ;;  %v1034_v47 = vpop.f32.mrf.mxu3 }
 0x2bc   : > { %v1035_v49 = vadd.f32 %v2967_v41, %v1034_v47  ;;  %v1054_v50 = vpop.f32.mrf.mxu1 }
 0x2bd   : > { %v1055_v51 = vadd.f32 %v2968_v42, %v1054_v50  ;;  %2782 = vmatpush.xpose.msk.msra.mxu3 %vm1189_vm8, %v1015_v46 }
 0x2be   : > { %2784 = vmatpush.xpose.msk.msra.mxu1 %vm1189_vm8, %v1035_v49 }
 0x2bf   : > { %2786 = vmatpush.xpose.msk.msra.mxu2 %vm1189_vm8, %v1055_v51 }
 0x2c0   : > { %2783 = vmatmul.msk.f32.vlgmr.msra.gmra.mxu3 %vm1189_vm8, %v903_v52 }
 0x2c1   : > { %2785 = vmatmul.msk.f32.vlgmr.msra.gmra.mxu1 %vm1189_vm8, %v923_v53 }
 0x2c2   : > { %2787 = vmatmul.msk.f32.vlgmr.msra.gmra.mxu2 %vm1189_vm8, %v943_v55 }
 0x2c3   : > { %v1074_v59 = vpop.f32.mrf.mxu2  ;;  %v1126_v61 = vpop.f32.mrf.mxu3 }
 0x2c4   : > { %v1075_v60 = vadd.f32 %v2969_v54, %v1074_v59  ;;  %v1127_v62 = vadd.f32 %v2970_v56, %v1126_v61  ;;  %v1146_v63 = vpop.f32.mrf.mxu1 }
 0x2c5   : > { %v1147_v0 = vadd.f32 %v2971_v57, %v1146_v63 }
 0x2c6   : > { %2788 = vmatpush.xpose.msk.msrb.mxu3 %vm1189_vm8, %v1075_v60  ;;  %1412 = vmatpush.msrb.mxu0 %v1127_v62 }
 0x2c7   : > { %1435 = vmatpush.msrb.mxu1 %v1147_v0 }
 0x2c9   : > { %2789 = vmatmul.msk.f32.vlgmr.msrb.gmra.mxu3 %vm1189_vm8, %v963_v1 }
 0x2cb   : > { %v1166_v4 = vpop.f32.mrf.mxu2  ;;  %v1186_v6 = vpop.f32.mrf.mxu3 }
 0x2cc   : > { %v1167_v5 = vadd.f32 %v2972_v2, %v1166_v4  ;;  %v1187_v7 = vadd.f32 %v2973_v3, %v1186_v6 }
 0x2ce   : > { %1458 = vmatpush.msrb.mxu2 %v1167_v5  ;;  %1481 = vmatpush.msra.mxu3 %v1187_v7 }
 0x33e   : > { %v1239_v13 = vpop.f32.mrf.mxu1 }
 0x33f   : > { %v1295_v15 = vmul.f32 0.35355338, %v1239_v13 }
 0x341   : > { %v1301_v18 = vsel %vm1189_vm8, %v1295_v15, -inf }
 0x343   : > { %v1213_v8 = vpop.f32.mrf.mxu3 }
 0x344   : > { %v1294_v19 = vmul.f32 0.35355338, %v1213_v8 }
 0x345   : > { %v1265_v9 = vpop.f32.mrf.mxu2 }
 0x346   : > { %v1296_v11 = vmul.f32 0.35355338, %v1265_v9  ;;  %v1298_v20 = vsel %vm1189_vm8, %v1294_v19, -inf }
 0x348   : > { %v1304_v12 = vsel %vm1189_vm8, %v1296_v11, -inf }
 0x349   : > { %1305 = vmax.xlane.f32.xlu1 %v1304_v12 }
 0x34c   : > { %v1291_v14 = vpop.f32.mrf.mxu3 }
 0x34d   : > { %v1297_v16 = vmul.f32 0.35355338, %v1291_v14 }
 0x34f   : > { %v1307_v17 = vsel %vm1189_vm8, %v1297_v16, -inf }
 0x350   : > { %1308 = vmax.xlane.f32.xlu2 %v1307_v17 }
 0x351   : > { %1302 = vmax.xlane.f32.xlu1 %v1301_v18 }
 0x358   : > { %1299 = vmax.xlane.f32.xlu2 %v1298_v20 }
 0x3bc   : > { %v1306_v21 = vpop.xlane.xlu1 %1305 }
 0x3bd   : > { %v1312_v22 = vsub.f32 %v1296_v11, %v1306_v21 }
 0x3bf   : > { %v1318_v23 = vmul.f32 1.442695, %v1312_v22 }
 0x3c1   : > { %3004 = vpow2.f32 %v1318_v23 }
 0x3c3   : > { %v1309_v24 = vpop.xlane.xlu2 %1308 }
 0x3c4   : > { %v1313_v25 = vsub.f32 %v1297_v16, %v1309_v24  ;;  %v1303_v26 = vpop.xlane.xlu1 %1302 }
 0x3c5   : > { %v1311_v28 = vsub.f32 %v1295_v15, %v1303_v26 }
 0x3c6   : > { %v1320_v27 = vmul.f32 1.442695, %v1313_v25 }
 0x3c7   : > { %v3005_v29 = vpop.eup %3004  ;;  %v1316_v32 = vmul.f32 1.442695, %v1311_v28  ;;  %v1489_v28 = vld [vmem:[%s4153_s11 + $0x18] sm:$0xff] }
 0x3c8   : > { %3006 = vpow2.f32 %v1320_v27  ;;  %v1328_v31 = vsel %vm1189_vm8, %v3005_v29, 0.0  ;;  %v1488_v27 = vld [vmem:[%s4153_s11 + $0x10] sm:$0xff]  ;;  %1577 = vmatpush.msrb.mxu3 %v1489_v28 }
 0x3c9   : > { %1329 = vadd.xlane.f32.xlu2 %v1328_v31  ;;  %3008 = vpow2.f32 %v1316_v32  ;;  %1554 = vmatpush.msra.mxu2 %v1488_v27  ;;  %v1487_v31 = vld [vmem:[%s4153_s11 + $0x8] sm:$0xff] }
 0x3ca   : > { %1531 = vmatpush.msra.mxu1 %v1487_v31 }
 0x3cb   : > { %v1300_v33 = vpop.xlane.xlu2 %1299 }
 0x3cc   : > { %v1310_v34 = vsub.f32 %v1294_v19, %v1300_v33 }
 0x3ce   : > { %v3007_v35 = vpop.eup %3006  ;;  %v1314_v36 = vmul.f32 1.442695, %v1310_v34 }
 0x3cf   : > { %v1331_v37 = vsel %vm1189_vm8, %v3007_v35, 0.0  ;;  %v3579_v38 = vpop.eup %3008 }
 0x3d0   : > { %3010 = vpow2.f32 %v1314_v36  ;;  %1332 = vadd.xlane.f32.xlu1 %v1331_v37  ;;  %v1325_v40 = vsel %vm1189_vm8, %v3579_v38, 0.0 }
 0x3d6   : > { %v3581_v39 = vpop.eup %3010 }
 0x3d7   : > { %v1322_v41 = vsel %vm1189_vm8, %v3581_v39, 0.0 }
 0x3d8   : > { %1326 = vadd.xlane.f32.xlu1 %v1325_v40  ;;  %1323 = vadd.xlane.f32.xlu2 %v1322_v41 }
 0x43c   : > { %v1330_v42 = vpop.xlane.xlu2 %1329 }
 0x43d   : > { %3012 = vrcp.f32 %v1330_v42  ;;  %v1375_v47 = vand.u32 2147483648, %v1330_v42  ;;  %v1373_v49 = vand.u32 2147483647, %v1330_v42  ;;  %vm1369_vm10 = vweird.f32 %v1330_v42 }
 0x43f   : > { %v1376_v55 = vor.u32 1.1754944e-38, %v1375_v47  ;;  %vm1374_vm12 = vcmp.eq.f32.partialorder %v1373_v49, 8.507059e+37 }
 0x443   : > { %v1333_v43 = vpop.xlane.xlu1 %1332  ;;  %v3013_v44 = vpop.eup %3012 }
 0x444   : > { %3014 = vrcp.f32 %v1333_v43  ;;  %v1365_v45 = vmul.f32 %v3013_v44, %v1330_v42  ;;  %vm1370_vm9 = vweird.f32 %v3013_v44  ;;  %v1390_v59 = vand.u32 2147483648, %v1333_v43 }
 0x445   : > { %vm1371_vm11 = vmor %vm1369_vm10, %vm1370_vm9  ;;  %v1388_v61 = vand.u32 2147483647, %v1333_v43  ;;  %vm1384_vm14 = vweird.f32 %v1333_v43 }
 0x446   : > { %v1366_v46 = vsub.f32 1.0, %v1365_v45  ;;  %v1391_v1 = vor.u32 1.1754944e-38, %v1390_v59 }
 0x447   : > { %vm1389_vm0 = vcmp.eq.f32.partialorder %v1388_v61, 8.507059e+37 }
 0x448   : > { %v1367_v48 = vmul.f32 %v3013_v44, %v1366_v46  ;;  %v2974_v46 = vld [vmem:[%s4154_s12] ss:$0 sm:$0xff] }
 0x44a   : > { %v3015_v50 = vpop.eup %3014  ;;  %v1368_v51 = vadd.f32 %v3013_v44, %v1367_v48 }
 0x44b   : > { %v1380_v52 = vmul.f32 %v3015_v50, %v1333_v43  ;;  %v1327_v53 = vpop.xlane.xlu1 %1326  ;;  %v1324_v54 = vpop.xlane.xlu2 %1323  ;;  %vm1385_vm13 = vweird.f32 %v3015_v50 }
 0x44c   : > { %3016 = vrcp.f32 %v1327_v53  ;;  %v1372_v56 = vsel %vm1371_vm11, %v3013_v44, %v1368_v51  ;;  %vm1386_vm15 = vmor %vm1384_vm14, %vm1385_vm13  ;;  %v1360_v9 = vand.u32 2147483648, %v1327_v53  ;;  %v1358_v13 = vand.u32 2147483647, %v1327_v53 }
 0x44d   : > { %v1381_v57 = vsub.f32 1.0, %v1380_v52  ;;  %3018 = vrcp.f32 %v1324_v54  ;;  %v1377_v58 = vsel %vm1374_vm12, %v1376_v55, %v1372_v56  ;;  %v1345_v14 = vand.u32 2147483648, %v1324_v54  ;;  %v1630_v56 = vld [vmem:[%s4087_s15 + $0x18] sm:$0xff] }
 0x44e   : > { %v1378_v62 = vmul.f32 %v3005_v29, %v1377_v58  ;;  %v1343_v16 = vand.u32 2147483647, %v1324_v54  ;;  %vm1354_vm4 = vweird.f32 %v1327_v53  ;;  %v1361_v18 = vor.u32 1.1754944e-38, %v1360_v9  ;;  %v1486_v29 = vld [vmem:[%s4153_s11] sm:$0xff] }
 0x44f   : > { %v1382_v60 = vmul.f32 %v3015_v50, %v1381_v57  ;;  %vm1339_vm6 = vweird.f32 %v1324_v54  ;;  %vm1359_vm7 = vcmp.eq.f32.partialorder %v1358_v13, 8.507059e+37  ;;  %v1346_v21 = vor.u32 1.1754944e-38, %v1345_v14  ;;  %1508 = vmatpush.msra.mxu0 %v1486_v29  ;;  %v1628_v57 = vld [vmem:[%s4087_s15 + $0x8] sm:$0xff]  ;;  %v1627_v58 = vld [vmem:[%s4087_s15] sm:$0xff] }
 0x450   : > { %2792 = vmatmul.msk.f32.vlgmr.msrb.gmra.mxu2 %vm1189_vm8, %v1378_v62  ;;  %vm1344_vm10 = vcmp.eq.f32.partialorder %v1343_v16, 8.507059e+37  ;;  %v1672_v13 = vld [vmem:[%s4089_s17 + $0x28] sm:$0xff]  ;;  %v1671_v14 = vld [vmem:[%s4089_s17 + $0x20] sm:$0xff]  ;;  %v1669_v16 = vld [vmem:[%s4089_s17 + $0x10] sm:$0xff]  ;;  %vm1679_vm14 = vcmask 523264  }
 0x451   : > { %v1383_v63 = vadd.f32 %v3015_v50, %v1382_v60 }
 0x452   : > { %v3017_v0 = vpop.eup %3016 }
 0x453   : > { %v3019_v2 = vpop.eup %3018  ;;  %v1387_v3 = vsel %vm1386_vm15, %v3015_v50, %v1383_v63  ;;  %v1350_v4 = vmul.f32 %v3017_v0, %v1327_v53  ;;  %vm1355_vm1 = vweird.f32 %v3017_v0 }
 0x454   : > { %v1392_v5 = vsel %vm1389_vm0, %v1391_v1, %v1387_v3  ;;  %v1335_v6 = vmul.f32 %v3019_v2, %v1324_v54  ;;  %vm1340_vm2 = vweird.f32 %v3019_v2  ;;  %vm1356_vm5 = vmor %vm1354_vm4, %vm1355_vm1 }
 0x455   : > { %v1351_v7 = vsub.f32 1.0, %v1350_v4  ;;  %v1393_v8 = vmul.f32 %v3007_v35, %v1392_v5  ;;  %vm1341_vm9 = vmor %vm1339_vm6, %vm1340_vm2  ;;  %v2975_v4 = vld [vmem:[%s4085_s13] ss:$0 sm:$0xff] }
 0x456   : > { %v1336_v11 = vsub.f32 1.0, %v1335_v6 }
 0x457   : > { %v1352_v12 = vmul.f32 %v3017_v0, %v1351_v7  ;;  %2793 = vmatmul.msk.f32.vlgmr.msra.gmra.mxu3 %vm1189_vm8, %v1393_v8  ;;  %v2976_v7 = vld [vmem:[%s4086_s14] ss:$0 sm:$0xff] }
 0x458   : > { %v1337_v15 = vmul.f32 %v3019_v2, %v1336_v11  ;;  %v1674_v11 = vld [vmem:[%s4089_s17 + $0x38] sm:$0xff] }
 0x459   : > { %v1353_v17 = vadd.f32 %v3017_v0, %v1352_v12  ;;  %v1673_v12 = vld [vmem:[%s4089_s17 + $0x30] sm:$0xff] }
 0x45a   : > { %v1338_v19 = vadd.f32 %v3019_v2, %v1337_v15  ;;  %v1670_v15 = vld [vmem:[%s4089_s17 + $0x18] sm:$0xff] }
 0x45b   : > { %v1357_v20 = vsel %vm1356_vm5, %v3017_v0, %v1353_v17  ;;  %v1668_v17 = vld [vmem:[%s4089_s17 + $0x8] sm:$0xff] }
 0x45c   : > { %v1362_v22 = vsel %vm1359_vm7, %v1361_v18, %v1357_v20  ;;  %v1342_v23 = vsel %vm1341_vm9, %v3019_v2, %v1338_v19  ;;  %v1667_v18 = vld [vmem:[%s4089_s17] sm:$0xff] }
 0x45d   : > { %v1347_v24 = vsel %vm1344_vm10, %v1346_v21, %v1342_v23  ;;  %v1363_v25 = vmul.f32 %v3579_v38, %v1362_v22  ;;  %v2977_v19 = vld [vmem:[%s4088_s16] ss:$0 sm:$0xff] }
 0x45e   : > { %v1348_v26 = vmul.f32 %v3581_v39, %v1347_v24 }
 0x45f   : > { %2791 = vmatmul.msk.f32.vlgmr.msrb.gmra.mxu1 %vm1189_vm8, %v1363_v25 }
 0x460   : > { %2790 = vmatmul.msk.f32.vlgmr.msrb.gmra.mxu0 %vm1189_vm8, %v1348_v26  ;;  %1691 = vmatpush.msrb.mxu1 %v1674_v11  ;;  %v2828_v11 = vld [vmem:[%s4145_s25 + $0xa0] sm:$0xff] }
 0x461   : > { %1650 = vmatpush.msrb.mxu0 %v1630_v56  ;;  %v2808_v56 = vld [vmem:[%s4144_s24 + $0xc0] sm:$0xff] }
 0x462   : > { %1692 = vmatpush.msrb.mxu1 %v1673_v12  ;;  %v2856_v12 = vld [vmem:[%s4148_s27 + $0xc0] sm:$0xff] }
 0x464   : > { %1693 = vmatpush.msrb.mxu1 %v1672_v13 }
 0x466   : > { %1694 = vmatpush.msrb.mxu1 %v1671_v14 }
 0x468   : > { %1695 = vmatpush.msrb.mxu1 %v1670_v15 }
 0x46a   : > { %1696 = vmatpush.msrb.mxu1 %v1669_v16 }
 0x46c   : > { %1697 = vmatpush.msrb.mxu1 %v1668_v17 }
 0x46e   : > { %1698 = vmatpush.msrb.mxu1 %v1667_v18 }
 0x4d3   : > { %v1460_v32 = vpop.f32.mrf.mxu2 }
 0x4d4   : > { %2796 = vmatmul.msk.f32.vlgmr.msra.gmra.mxu2 %vm1189_vm8, %v1460_v32  ;;  %v2978_v32 = vld [vmem:[%s4090_s18] ss:$0 sm:$0xff] }
 0x4da   : > { %v1483_v33 = vpop.f32.mrf.mxu3 }
 0x4db   : > { %2797 = vmatmul.msk.f32.vlgmr.msrb.gmra.mxu3 %vm1189_vm8, %v1483_v33 }
 0x4dc   : > { %v1437_v34 = vpop.f32.mrf.mxu1 }
 0x4dd   : > { %v1414_v35 = vpop.f32.mrf.mxu0  ;;  %2795 = vmatmul.msk.f32.vlgmr.msra.gmra.mxu1 %vm1189_vm8, %v1437_v34 }
 0x4de   : > { %2794 = vmatmul.msk.f32.vlgmr.msra.gmra.mxu0 %vm1189_vm8, %v1414_v35 }
 0x557   : > { %v1556_v37 = vpop.f32.mrf.mxu2 }
 0x558   : > { %v1585_v42 = vsel %vm812_vm3, %v1556_v37, 0.0 }
 0x55a   : > { %v1533_v36 = vpop.f32.mrf.mxu1 }
 0x55b   : > { %v1510_v38 = vpop.f32.mrf.mxu0  ;;  %v1583_v39 = vsel %vm812_vm3, %v1533_v36, 0.0 }
 0x55c   : > { %v1582_v40 = vsel %vm812_vm3, %v1510_v38, 0.0 }
 0x55d   : > { %v1584_v41 = vadd.f32 %v1583_v39, %v1582_v40 }
 0x55e   : > { %v1579_v43 = vpop.f32.mrf.mxu3 }
 0x55f   : > { %v1586_v44 = vadd.f32 %v1585_v42, %v1584_v41  ;;  %v1587_v45 = vsel %vm812_vm3, %v1579_v43, 0.0  ;;  %v2803_v42 = vld [vmem:[%s4144_s24 + $0x98] sm:$0xff] }
 0x560   : > { %v2807_v43 = vld [vmem:[%s4144_s24 + $0xb8] sm:$0xff]  ;;  %1785 = vmatpush.msrb.mxu2 %v2803_v42  ;;  %v2982_v42 = vld [vmem:[%s4150_s28 + $0x6] ss:$0 sm:$0xff] }
 0x561   : > { %v1588_v47 = vadd.f32 %v1587_v45, %v1586_v44  ;;  %v2811_v44 = vld [vmem:[%s4144_s24 + $0xd8] sm:$0xff]  ;;  %1805 = vmatpush.msra.mxu3 %v2807_v43  ;;  %v2981_v43 = vld [vmem:[%s4151_s1 + $0x6] ss:$0 sm:$0xff] }
 0x562   : > { %v2835_v45 = vld [vmem:[%s4145_s25 + $0xd8] sm:$0xff] }
 0x563   : > { %v1593_v48 = vadd.f32 %v2974_v46, %v1588_v47  ;;  %1939 = vmatpush.msra.mxu1 %v2835_v45  ;;  %v2802_v46 = vld [vmem:[%s4144_s24 + $0x90] sm:$0xff] }
 0x564   : > { %v2806_v47 = vld [vmem:[%s4144_s24 + $0xb0] sm:$0xff]  ;;  %1786 = vmatpush.msrb.mxu2 %v2802_v46 }
 0x565   : > { %v1594_v49 = vadd.f32 %v1593_v48, %v3431_v10  ;;  %v1629_v10 = vld [vmem:[%s4087_s15 + $0x10] sm:$0xff]  ;;  %1806 = vmatpush.msra.mxu3 %v2806_v47 }
 0x566   : > { %1651 = vmatpush.msrb.mxu0 %v1629_v10  ;;  %v2810_v48 = vld [vmem:[%s4144_s24 + $0xd0] sm:$0xff]  ;;  %v2832_v10 = vld [vmem:[%s4145_s25 + $0xc0] sm:$0xff] }
 0x567   : > { %v1597_v50 = vsel %vm812_vm3, %v1594_v49, 0.0 }
 0x568   : > { %1598 = vadd.xlane.f32.xlu2 %v1597_v50  ;;  %1652 = vmatpush.msrb.mxu0 %v1628_v57  ;;  %v2801_v50 = vld [vmem:[%s4144_s24 + $0x88] sm:$0xff]  ;;  %v2815_v57 = vld [vmem:[%s4144_s24 + $0xf8] sm:$0xff] }
 0x569   : > { %1787 = vmatpush.msrb.mxu2 %v2801_v50  ;;  %v2985_v50 = vld [vmem:[%s4150_s28 + $0x5] ss:$0 sm:$0xff] }
 0x56a   : > { %1653 = vmatpush.msrb.mxu0 %v1627_v58  ;;  %v2827_v58 = vld [vmem:[%s4145_s25 + $0x98] sm:$0xff] }
 0x56c   : > { %1825 = vmatpush.msra.mxu0 %v2811_v44 }
 0x56e   : > { %1826 = vmatpush.msra.mxu0 %v2810_v48 }
 0x5db   : > { %v1599_v51 = vpop.xlane.xlu2 %1598 }
 0x5dc   : > { %v1600_v52 = vmul.f32 %v1599_v51, %v3343_v30  ;;  %v2805_v51 = vld [vmem:[%s4144_s24 + $0xa8] sm:$0xff] }
 0x5dd   : > { %1807 = vmatpush.msra.mxu3 %v2805_v51  ;;  %v2986_v51 = vld [vmem:[%s4152_s10 + $0x6] ss:$0 sm:$0xff] }
 0x5de   : > { %v1601_v53 = vsub.f32 %v1594_v49, %v1600_v52  ;;  %v2834_v49 = vld [vmem:[%s4145_s25 + $0xd0] sm:$0xff]  ;;  %v2809_v52 = vld [vmem:[%s4144_s24 + $0xc8] sm:$0xff] }
 0x5df   : > { %1940 = vmatpush.msra.mxu1 %v2834_v49  ;;  %1827 = vmatpush.msra.mxu0 %v2809_v52  ;;  %v2984_v52 = vld [vmem:[%s4151_s1 + $0x5] ss:$0 sm:$0xff] }
 0x5e0   : > { %v1602_v54 = vmul.f32 %v1601_v53, %v1601_v53 }
 0x5e1   : > { %1828 = vmatpush.msra.mxu0 %v2808_v56 }
 0x5e2   : > { %v1603_v55 = vsel %vm812_vm3, %v1602_v54, 0.0  ;;  %v2800_v54 = vld [vmem:[%s4144_s24 + $0x80] sm:$0xff] }
 0x5e3   : > { %1604 = vadd.xlane.f32.xlu1 %v1603_v55  ;;  %v2804_v55 = vld [vmem:[%s4144_s24 + $0xa0] sm:$0xff]  ;;  %1788 = vmatpush.msrb.mxu2 %v2800_v54 }
 0x5e4   : > { %1808 = vmatpush.msra.mxu3 %v2804_v55 }
 0x5e5   : > { %1845 = vmatpush.msra.mxu2 %v2815_v57 }
 0x5e6   : > { %1899 = vmatpush.msrb.mxu3 %v2827_v58  ;;  %v2983_v58 = vld [vmem:[%s4151_s1 + $0x4] ss:$0 sm:$0xff] }
 0x656   : > { %v1605_v59 = vpop.xlane.xlu1 %1604 }
 0x657   : > { %v1606_v60 = vmul.f32 %v1605_v59, %v3343_v30  ;;  %v2831_v59 = vld [vmem:[%s4145_s25 + $0xb8] sm:$0xff] }
 0x659   : > { %v1607_v61 = vadd.f32 1e-12, %v1606_v60  ;;  %v2859_v60 = vld [vmem:[%s4148_s27 + $0xd8] sm:$0xff] }
 0x65b   : > { %3020 = vrsqrt.f32 %v1607_v61  ;;  %vm1614_vm12 = vweird.f32 %v1607_v61 }
 0x661   : > { %v3021_v62 = vpop.eup %3020 }
 0x662   : > { %v1609_v63 = vmul.f32 %v3021_v62, %v1607_v61  ;;  %vm1615_vm11 = vweird.f32 %v3021_v62  ;;  %v2814_v61 = vld [vmem:[%s4144_s24 + $0xf0] sm:$0xff] }
 0x663   : > { %vm1616_vm13 = vmor %vm1614_vm12, %vm1615_vm11  ;;  %1846 = vmatpush.msra.mxu2 %v2814_v61  ;;  %v2989_v61 = vld [vmem:[%s4152_s10 + $0x5] ss:$0 sm:$0xff] }
 0x664   : > { %v1610_v0 = vmul.f32 %v3021_v62, %v1609_v63 }
 0x666   : > { %v1611_v1 = vmul.f32 0.5, %v1610_v0  ;;  %v2830_v0 = vld [vmem:[%s4145_s25 + $0xb0] sm:$0xff] }
 0x668   : > { %v1612_v2 = vsub.f32 1.5, %v1611_v1  ;;  %v2858_v1 = vld [vmem:[%s4148_s27 + $0xd0] sm:$0xff] }
 0x66a   : > { %v1613_v3 = vmul.f32 %v3021_v62, %v1612_v2 }
 0x66c   : > { %v1617_v5 = vsel %vm1616_vm13, %v3021_v62, %v1613_v3  ;;  %v2826_v62 = vld [vmem:[%s4145_s25 + $0x90] sm:$0xff]  ;;  %v2813_v3 = vld [vmem:[%s4144_s24 + $0xe8] sm:$0xff] }
 0x66d   : > { %v1618_v6 = vmul.f32 %v1617_v5, %v1601_v53  ;;  %v2833_v53 = vld [vmem:[%s4145_s25 + $0xc8] sm:$0xff]  ;;  %1900 = vmatpush.msrb.mxu3 %v2826_v62  ;;  %1847 = vmatpush.msra.mxu2 %v2813_v3  ;;  %v2991_v3 = vld [vmem:[%s4152_s10 + $0x4] ss:$0 sm:$0xff] }
 0x66e   : > { %1941 = vmatpush.msra.mxu1 %v2833_v53  ;;  %v2829_v5 = vld [vmem:[%s4145_s25 + $0xa8] sm:$0xff] }
 0x66f   : > { %v1622_v8 = vmul.f32 %v2975_v4, %v1618_v6  ;;  %v2825_v4 = vld [vmem:[%s4145_s25 + $0x88] sm:$0xff] }
 0x670   : > { %1942 = vmatpush.msra.mxu1 %v2832_v10  ;;  %v2857_v6 = vld [vmem:[%s4148_s27 + $0xc8] sm:$0xff]  ;;  %1901 = vmatpush.msrb.mxu3 %v2825_v4  ;;  %v2988_v10 = vld [vmem:[%s4150_s28 + $0x4] ss:$0 sm:$0xff]  ;;  %v2987_v4 = vld [vmem:[%s4151_s1 + $0x7] ss:$0 sm:$0xff]  ;;  %s4158_s1 = sld [smem:[#allocation26_spill]] }
 0x671   : > { %v1626_v9 = vadd.f32 %v2976_v7, %v1622_v8  ;;  %v2812_v8 = vld [vmem:[%s4144_s24 + $0xe0] sm:$0xff] }
 0x672   : > { %1848 = vmatpush.msra.mxu2 %v2812_v8 }
 0x673   : > { %2798 = vmatmul.msk.f32.vlgmr.msrb.gmra.mxu0 %vm812_vm3, %v1626_v9 }
 0x674   : > { %1919 = vmatpush.msrb.mxu0 %v2831_v59 }
 0x676   : > { %1920 = vmatpush.msrb.mxu0 %v2830_v0 }
 0x678   : > { %1921 = vmatpush.msrb.mxu0 %v2829_v5 }
 0x67a   : > { %1922 = vmatpush.msrb.mxu0 %v2828_v11  ;;  %v2992_v11 = vld [vmem:[%s4152_s10 + $0x7] ss:$0 sm:$0xff]  ;;  %s754_s10 = scalar_lea.vmem [#allocation2], %s753_s22 }
 0x6f0   : > { %v1655_v20 = vpop.f32.mrf.mxu0 }
 0x6f1   : > { %v1656_v21 = vadd.f32 %v2977_v19, %v1655_v20  ;;  %v2979_v19 = vld [vmem:[%s4091_s19] ss:$0 sm:$0xff] }
 0x6f3   : > { %v1658_v22 = vmul.f32 %v1656_v21, %v1656_v21 }
 0x6f5   : > { %v1659_v23 = vmul.f32 %v1658_v22, %v1656_v21 }
 0x6f7   : > { %v1660_v24 = vmul.f32 0.044715, %v1659_v23 }
 0x6f9   : > { %v1661_v25 = vadd.f32 %v1660_v24, %v1656_v21 }
 0x6fb   : > { %v1662_v26 = vmul.f32 0.7978846, %v1661_v25  ;;  %v2839_v25 = vld [vmem:[%s4145_s25 + $0xf8] sm:$0xff] }
 0x6fd   : > { %3022 = vtanh.f32 %v1662_v26  ;;  %v2851_v26 = vld [vmem:[%s4148_s27 + $0x98] sm:$0xff] }
 0x703   : > { %v3023_v27 = vpop.eup %3022 }
 0x704   : > { %v1664_v28 = vadd.f32 1.0, %v3023_v27  ;;  %v2855_v27 = vld [vmem:[%s4148_s27 + $0xb8] sm:$0xff] }
 0x706   : > { %v1665_v29 = vmul.f32 0.5, %v1664_v28  ;;  %v2838_v28 = vld [vmem:[%s4145_s25 + $0xf0] sm:$0xff] }
 0x708   : > { %v1666_v31 = vmul.f32 %v1665_v29, %v1656_v21  ;;  %v2980_v21 = vld [vmem:[%s4092_s20] ss:$0 sm:$0xff]  ;;  %v2850_v29 = vld [vmem:[%s4148_s27 + $0x90] sm:$0xff] }
 0x70a   : > { %2799 = vmatmul.msk.f32.vlgmr.msrb.gmra.mxu1 %vm1679_vm14, %v1666_v31  ;;  %v2854_v31 = vld [vmem:[%s4148_s27 + $0xb0] sm:$0xff] }
 0x70b   : > { %2053 = vmatpush.msrb.mxu1 %v2859_v60 }
 0x70d   : > { %2054 = vmatpush.msrb.mxu1 %v2858_v1 }
 0x70f   : > { %2055 = vmatpush.msrb.mxu1 %v2857_v6 }
 0x711   : > { %2056 = vmatpush.msrb.mxu1 %v2856_v12 }
 0x787   : > { %v1700_v33 = vpop.f32.mrf.mxu1 }
 0x788   : > { %v1701_v34 = vadd.f32 %v2978_v32, %v1700_v33  ;;  %v2837_v32 = vld [vmem:[%s4145_s25 + $0xe8] sm:$0xff] }
 0x789   : > { %v2849_v33 = vld [vmem:[%s4148_s27 + $0x88] sm:$0xff] }
 0x78a   : > { %v1703_v35 = vadd.f32 %v1701_v34, %v1626_v9  ;;  %v2824_v9 = vld [vmem:[%s4145_s25 + $0x80] sm:$0xff]  ;;  %v2853_v34 = vld [vmem:[%s4148_s27 + $0xa8] sm:$0xff] }
 0x78b   : > { %1902 = vmatpush.msrb.mxu3 %v2824_v9 }
 0x78c   : > { %v1706_v36 = vsel %vm812_vm3, %v1703_v35, 0.0 }
 0x78d   : > { %1707 = vadd.xlane.f32.xlu2 %v1706_v36  ;;  %v2848_v36 = vld [vmem:[%s4148_s27 + $0x80] sm:$0xff] }
 0x800   : > { %v1708_v37 = vpop.xlane.xlu2 %1707 }
 0x801   : > { %v1709_v38 = vmul.f32 %v1708_v37, %v3343_v30  ;;  %v2852_v37 = vld [vmem:[%s4148_s27 + $0xa0] sm:$0xff] }
 0x803   : > { %v3673_v39 = vsub.f32 %v1703_v35, %v1709_v38  ;;  %v2836_v35 = vld [vmem:[%s4145_s25 + $0xe0] sm:$0xff]  ;;  %v2863_v38 = vld [vmem:[%s4148_s27 + $0xf8] sm:$0xff] }
 0x805   : > { %v1711_v40 = vmul.f32 %v3673_v39, %v3673_v39 }
 0x807   : > { %v1712_v41 = vsel %vm812_vm3, %v1711_v40, 0.0  ;;  %v2861_v40 = vld [vmem:[%s4148_s27 + $0xe8] sm:$0xff] }
 0x808   : > { %1713 = vadd.xlane.f32.xlu1 %v1712_v41  ;;  %v2860_v41 = vld [vmem:[%s4148_s27 + $0xe0] sm:$0xff] }
 0x87b   : > { %v1714_v63 = vpop.xlane.xlu1 %1713 }
 0x87c   : > { %v1715_v2 = vmul.f32 %v1714_v63, %v3343_v30 }
 0x87e   : > { %v1716_v7 = vadd.f32 1e-12, %v1715_v2  ;;  %v2990_v2 = vld [vmem:[%s4150_s28 + $0x7] ss:$0 sm:$0xff] }
 0x880   : > { %3024 = vrsqrt.f32 %v1716_v7  ;;  %vm1723_vm0 = vweird.f32 %v1716_v7 }
 0x886   : > { %v3025_v13 = vpop.eup %3024 }
 0x887   : > { %v1718_v14 = vmul.f32 %v3025_v13, %v1716_v7  ;;  %vm1724_vm15 = vweird.f32 %v3025_v13 }
 0x888   : > { %vm1725_vm1 = vmor %vm1723_vm0, %vm1724_vm15 }
 0x889   : > { %v1719_v15 = vmul.f32 %v3025_v13, %v1718_v14 }
 0x88b   : > { %v1720_v16 = vmul.f32 0.5, %v1719_v15 }
 0x88d   : > { %v1721_v17 = vsub.f32 1.5, %v1720_v16 }
 0x88f   : > { %v1722_v18 = vmul.f32 %v3025_v13, %v1721_v17 }
 0x891   : > { %v1726_v20 = vsel %vm1725_vm1, %v3025_v13, %v1722_v18 }
 0x892   : > { %v1727_v22 = vmul.f32 %v1726_v20, %v3673_v39  ;;  %v2862_v39 = vld [vmem:[%s4148_s27 + $0xf0] sm:$0xff] }
 0x894   : > { %v1731_v23 = vmul.f32 %v2979_v19, %v1727_v22 }
 0x896   : > { %v3782_v24 = vadd.f32 %v2980_v21, %v1731_v23 }
 0x898   : > { %2820 = vmatmul.msk.f32.vlgmr.msrb.gmra.mxu2 %vm812_vm3, %v3782_v24  ;;  %2821 = vmatmul.msk.f32.vlgmr.msra.gmra.mxu3 %vm812_vm3, %v3782_v24 }
 0x899   : > { %2822 = vmatmul.msk.f32.vlgmr.msra.gmra.mxu0 %vm812_vm3, %v3782_v24  ;;  %2846 = vmatmul.msk.f32.vlgmr.msra.gmra.mxu1 %vm812_vm3, %v3782_v24 }
 0x89a   : > { %1959 = vmatpush.msrb.mxu2 %v2839_v25  ;;  %2013 = vmatpush.msra.mxu3 %v2851_v26 }
 0x89b   : > { %2033 = vmatpush.msra.mxu0 %v2855_v27 }
 0x89c   : > { %1960 = vmatpush.msrb.mxu2 %v2838_v28  ;;  %2014 = vmatpush.msra.mxu3 %v2850_v29 }
 0x89d   : > { %2034 = vmatpush.msra.mxu0 %v2854_v31 }
 0x89e   : > { %1961 = vmatpush.msrb.mxu2 %v2837_v32  ;;  %2015 = vmatpush.msra.mxu3 %v2849_v33 }
 0x89f   : > { %2035 = vmatpush.msra.mxu0 %v2853_v34 }
 0x8a0   : > { %2823 = vmatmul.msk.f32.vlgmr.msra.gmra.mxu2 %vm812_vm3, %v3782_v24  ;;  %2844 = vmatmul.msk.f32.vlgmr.msrb.gmra.mxu3 %vm812_vm3, %v3782_v24 }
 0x8a1   : > { %2845 = vmatmul.msk.f32.vlgmr.msrb.gmra.mxu0 %vm812_vm3, %v3782_v24  ;;  %2870 = vmatmul.msk.f32.vlgmr.msrb.gmra.mxu1 %vm812_vm3, %v3782_v24 }
 0x8a2   : > { %1962 = vmatpush.msrb.mxu2 %v2836_v35  ;;  %2016 = vmatpush.msra.mxu3 %v2848_v36 }
 0x8a3   : > { %2036 = vmatpush.msra.mxu0 %v2852_v37 }
 0x8a4   : > { %2073 = vmatpush.msra.mxu2 %v2863_v38 }
 0x8a6   : > { %2074 = vmatpush.msra.mxu2 %v2862_v39 }
 0x8a8   : > { %2075 = vmatpush.msra.mxu2 %v2861_v40  ;;  %2868 = vmatmul.msk.f32.vlgmr.msra.gmra.mxu3 %vm812_vm3, %v3782_v24 }
 0x8a9   : > { %2847 = vmatmul.msk.f32.vlgmr.msrb.gmra.mxu2 %vm812_vm3, %v3782_v24  ;;  %2869 = vmatmul.msk.f32.vlgmr.msra.gmra.mxu0 %vm812_vm3, %v3782_v24 }
 0x8aa   : > { %2076 = vmatpush.msra.mxu2 %v2860_v41 }
 0x8b1   : > { %2871 = vmatmul.msk.f32.vlgmr.msra.gmra.mxu2 %vm812_vm3, %v3782_v24 }
 0x916   : > { %v1830_v44 = vpop.f32.mrf.mxu0  ;;  %v1944_v45 = vpop.f32.mrf.mxu1 }
 0x917   : > { %v1945_v46 = vadd.f32 %v2982_v42, %v1944_v45  ;;  %v1831_v47 = vadd.f32 %v2981_v43, %v1830_v44 }
 0x919   : > { %2876 = vmatpush.xpose.msk.msra.mxu1 %vm1189_vm8, %v1945_v46 }
 0x91b   : > { %v1790_v48 = vpop.f32.mrf.mxu2  ;;  %v1810_v49 = vpop.f32.mrf.mxu3 }
 0x91c   : > { %2877 = vmatmul.msk.f32.vlgmr.msra.gmra.mxu1 %vm1189_vm8, %v1831_v47  ;;  %v1811_v57 = vadd.f32 %v2984_v52, %v1810_v49  ;;  %v1791_v0 = vadd.f32 %v2983_v58, %v1790_v48 }
 0x91e   : > { %v1924_v53 = vpop.f32.mrf.mxu0  ;;  %v2058_v54 = vpop.f32.mrf.mxu1 }
 0x91f   : > { %v1925_v55 = vadd.f32 %v2985_v50, %v1924_v53  ;;  %v2059_v56 = vadd.f32 %v2986_v51, %v2058_v54 }
 0x921   : > { %2874 = vmatpush.xpose.msk.msrb.mxu0 %vm1189_vm8, %v1925_v55  ;;  %2349 = vmatpush.msrb.mxu1 %v2059_v56 }
 0x923   : > { %v1850_v59 = vpop.f32.mrf.mxu2  ;;  %v1904_v60 = vpop.f32.mrf.mxu3 }
 0x924   : > { %v1905_v62 = vadd.f32 %v2988_v10, %v1904_v60  ;;  %2875 = vmatmul.msk.f32.vlgmr.msrb.gmra.mxu0 %vm1189_vm8, %v1811_v57  ;;  %v1851_v9 = vadd.f32 %v2987_v4, %v1850_v59 }
 0x926   : > { %v2038_v63 = vpop.f32.mrf.mxu0  ;;  %2872 = vmatpush.xpose.msk.msrb.mxu3 %vm1189_vm8, %v1905_v62 }
 0x927   : > { %v2039_v1 = vadd.f32 %v2989_v61, %v2038_v63 }
 0x929   : > { %2326 = vmatpush.msra.mxu0 %v2039_v1  ;;  %2873 = vmatmul.msk.f32.vlgmr.msrb.gmra.mxu3 %vm1189_vm8, %v1791_v0 }
 0x92b   : > { %v2018_v6 = vpop.f32.mrf.mxu3 }
 0x92c   : > { %v1964_v5 = vpop.f32.mrf.mxu2  ;;  %v2019_v8 = vadd.f32 %v2991_v3, %v2018_v6 }
 0x92d   : > { %v1965_v7 = vadd.f32 %v2990_v2, %v1964_v5 }
 0x92e   : > { %2303 = vmatpush.msra.mxu3 %v2019_v8 }
 0x92f   : > { %2878 = vmatpush.xpose.msk.msrb.mxu2 %vm1189_vm8, %v1965_v7 }
 0x932   : > { %2879 = vmatmul.msk.f32.vlgmr.msrb.gmra.mxu2 %vm1189_vm8, %v1851_v9 }
 0x934   : > { %v2078_v12 = vpop.f32.mrf.mxu2 }
 0x935   : > { %v2079_v13 = vadd.f32 %v2992_v11, %v2078_v12 }
 0x937   : > { %2372 = vmatpush.msra.mxu2 %v2079_v13 }
 0x999   : > { %v2156_v20 = vpop.f32.mrf.mxu1 }
 0x99a   : > { %v2187_v21 = vmul.f32 0.35355338, %v2156_v20 }
 0x99c   : > { %v2195_v26 = vsel %vm1189_vm8, %v2187_v21, -inf }
 0x9a1   : > { %v2130_v14 = vpop.f32.mrf.mxu0 }
 0x9a2   : > { %v2186_v15 = vmul.f32 0.35355338, %v2130_v14 }
 0x9a4   : > { %v2192_v16 = vsel %vm1189_vm8, %v2186_v15, -inf }
 0x9a5   : > { %2193 = vmax.xlane.f32.xlu1 %v2192_v16 }
 0x9ac   : > { %v2104_v17 = vpop.f32.mrf.mxu3 }
 0x9ad   : > { %v2185_v18 = vmul.f32 0.35355338, %v2104_v17 }
 0x9af   : > { %v2189_v19 = vsel %vm1189_vm8, %v2185_v18, -inf }
 0x9b0   : > { %2190 = vmax.xlane.f32.xlu2 %v2189_v19 }
 0x9b5   : > { %v2182_v22 = vpop.f32.mrf.mxu2 }
 0x9b6   : > { %v2188_v23 = vmul.f32 0.35355338, %v2182_v22 }
 0x9b8   : > { %v2198_v25 = vsel %vm1189_vm8, %v2188_v23, -inf  ;;  %2196 = vmax.xlane.f32.xlu2 %v2195_v26 }
 0x9b9   : > { %2199 = vmax.xlane.f32.xlu0 %v2198_v25 }
 0xa18   : > { %v2194_v27 = vpop.xlane.xlu1 %2193 }
 0xa19   : > { %v2202_v28 = vsub.f32 %v2186_v15, %v2194_v27 }
 0xa1b   : > { %v2207_v29 = vmul.f32 1.442695, %v2202_v28 }
 0xa1d   : > { %3026 = vpow2.f32 %v2207_v29 }
 0xa23   : > { %v3027_v31 = vpop.eup %3026  ;;  %v2191_v32 = vpop.xlane.xlu2 %2190 }
 0xa24   : > { %v2201_v33 = vsub.f32 %v2185_v18, %v2191_v32  ;;  %v2216_v34 = vsel %vm1189_vm8, %v3027_v31, 0.0 }
 0xa25   : > { %2217 = vadd.xlane.f32.xlu2 %v2216_v34  ;;  %v2885_v34 = vld [vmem:[%s4153_s11 + $0x28] sm:$0xff] }
 0xa26   : > { %v2205_v35 = vmul.f32 1.442695, %v2201_v33  ;;  %2423 = vmatpush.msrb.mxu0 %v2885_v34 }
 0xa28   : > { %3028 = vpow2.f32 %v2205_v35  ;;  %v2884_v35 = vld [vmem:[%s4153_s11 + $0x20] sm:$0xff] }
 0xa29   : > { %2400 = vmatpush.msrb.mxu3 %v2884_v35 }
 0xa2b   : > { %v2197_v37 = vpop.xlane.xlu2 %2196 }
 0xa2c   : > { %v2200_v36 = vpop.xlane.xlu0 %2199  ;;  %v2203_v39 = vsub.f32 %v2187_v21, %v2197_v37  ;;  %v2887_v37 = vld [vmem:[%s4153_s11 + $0x38] sm:$0xff] }
 0xa2d   : > { %v2204_v38 = vsub.f32 %v2188_v23, %v2200_v36  ;;  %v2886_v36 = vld [vmem:[%s4153_s11 + $0x30] sm:$0xff]  ;;  %2469 = vmatpush.msrb.mxu2 %v2887_v37  ;;  %s2705_s11 = sshll.u32 %s754_s10, 4  ;;  %s2706_s11 = int_to_ptr.vmem [resolvable:$true] %s2705_s11 }
 0xa2e   : > { %v3029_v40 = vpop.eup %3028  ;;  %v2209_v42 = vmul.f32 1.442695, %v2203_v39  ;;  %2446 = vmatpush.msra.mxu1 %v2886_v36 }
 0xa2f   : > { %v2211_v41 = vmul.f32 1.442695, %v2204_v38  ;;  %v2213_v43 = vsel %vm1189_vm8, %v3029_v40, 0.0 }
 0xa30   : > { %2214 = vadd.xlane.f32.xlu0 %v2213_v43 }
 0xa31   : > { %3030 = vpow2.f32 %v2211_v41 }
 0xa32   : > { %3032 = vpow2.f32 %v2209_v42 }
 0xa37   : > { %v3906_v44 = vpop.eup %3030 }
 0xa38   : > { %v3908_v45 = vpop.eup %3032  ;;  %v2222_v46 = vsel %vm1189_vm8, %v3906_v44, 0.0 }
 0xa39   : > { %2223 = vadd.xlane.f32.xlu1 %v2222_v46  ;;  %v2219_v47 = vsel %vm1189_vm8, %v3908_v45, 0.0 }
 0xa3a   : > { %2220 = vadd.xlane.f32.xlu0 %v2219_v47 }
 0xa98   : > { %v2218_v48 = vpop.xlane.xlu2 %2217 }
 0xa99   : > { %3034 = vrcp.f32 %v2218_v48  ;;  %v2251_v52 = vand.u32 2147483648, %v2218_v48  ;;  %v2249_v55 = vand.u32 2147483647, %v2218_v48  ;;  %vm2245_vm4 = vweird.f32 %v2218_v48 }
 0xa9b   : > { %v2252_v10 = vor.u32 1.1754944e-38, %v2251_v52  ;;  %vm2250_vm6 = vcmp.eq.f32.partialorder %v2249_v55, 8.507059e+37 }
 0xa9f   : > { %v3035_v49 = vpop.eup %3034 }
 0xaa0   : > { %v2241_v50 = vmul.f32 %v3035_v49, %v2218_v48  ;;  %vm2246_vm2 = vweird.f32 %v3035_v49 }
 0xaa1   : > { %vm2247_vm5 = vmor %vm2245_vm4, %vm2246_vm2 }
 0xaa2   : > { %v2242_v51 = vsub.f32 1.0, %v2241_v50 }
 0xaa3   : > { %v2215_v53 = vpop.xlane.xlu0 %2214 }
 0xaa4   : > { %v2243_v54 = vmul.f32 %v3035_v49, %v2242_v51  ;;  %3036 = vrcp.f32 %v2215_v53  ;;  %v2236_v1 = vand.u32 2147483648, %v2215_v53  ;;  %v2234_v3 = vand.u32 2147483647, %v2215_v53  ;;  %v2993_v51 = vld [vmem:[%s4154_s12 + $0x1] ss:$0 sm:$0xff] }
 0xaa5   : > { %vm2230_vm9 = vweird.f32 %v2215_v53 }
 0xaa6   : > { %v2244_v56 = vadd.f32 %v3035_v49, %v2243_v54  ;;  %v2237_v6 = vor.u32 1.1754944e-38, %v2236_v1  ;;  %vm2235_vm11 = vcmp.eq.f32.partialorder %v2234_v3, 8.507059e+37 }
 0xaa8   : > { %v2248_v57 = vsel %vm2247_vm5, %v3035_v49, %v2244_v56 }
 0xaa9   : > { %v2253_v58 = vsel %vm2250_vm6, %v2252_v10, %v2248_v57 }
 0xaaa   : > { %v3037_v59 = vpop.eup %3036  ;;  %v2254_v60 = vmul.f32 %v3027_v31, %v2253_v58 }
 0xaab   : > { %v2226_v61 = vmul.f32 %v3037_v59, %v2215_v53  ;;  %vm2231_vm7 = vweird.f32 %v3037_v59 }
 0xaac   : > { %v2224_v62 = vpop.xlane.xlu1 %2223  ;;  %2881 = vmatmul.msk.f32.vlgmr.msra.gmra.mxu0 %vm1189_vm8, %v2254_v60  ;;  %vm2232_vm10 = vmor %vm2230_vm9, %vm2231_vm7 }
 0xaad   : > { %3038 = vrcp.f32 %v2224_v62  ;;  %v2221_v63 = vpop.xlane.xlu0 %2220  ;;  %v2227_v0 = vsub.f32 1.0, %v2226_v61  ;;  %v2281_v15 = vand.u32 2147483648, %v2224_v62  ;;  %v2279_v18 = vand.u32 2147483647, %v2224_v62  ;;  %v2898_v61 = vld [vmem:[%s4087_s15 + $0x38] sm:$0xff] }
 0xaae   : > { %3040 = vrcp.f32 %v2221_v63  ;;  %v2266_v19 = vand.u32 2147483648, %v2221_v63  ;;  %v2264_v21 = vand.u32 2147483647, %v2221_v63  ;;  %vm2275_vm15 = vweird.f32 %v2224_v62 }
 0xaaf   : > { %v2228_v2 = vmul.f32 %v3037_v59, %v2227_v0  ;;  %v2282_v23 = vor.u32 1.1754944e-38, %v2281_v15  ;;  %vm2260_vm1 = vweird.f32 %v2221_v63  ;;  %vm2280_vm2 = vcmp.eq.f32.partialorder %v2279_v18, 8.507059e+37  ;;  %v2906_v18 = vld [vmem:[%s4089_s17 + $0x68] sm:$0xff] }
 0xab0   : > { %v2267_v27 = vor.u32 1.1754944e-38, %v2266_v19  ;;  %vm2265_vm5 = vcmp.eq.f32.partialorder %v2264_v21, 8.507059e+37  ;;  %v2905_v19 = vld [vmem:[%s4089_s17 + $0x60] sm:$0xff]  ;;  %v2903_v21 = vld [vmem:[%s4089_s17 + $0x50] sm:$0xff] }
 0xab1   : > { %v2229_v4 = vadd.f32 %v3037_v59, %v2228_v2 }
 0xab3   : > { %v3039_v5 = vpop.eup %3038  ;;  %v2233_v8 = vsel %vm2232_vm10, %v3037_v59, %v2229_v4 }
 0xab4   : > { %v3041_v7 = vpop.eup %3040  ;;  %v2271_v9 = vmul.f32 %v3039_v5, %v2224_v62  ;;  %v2238_v11 = vsel %vm2235_vm11, %v2237_v6, %v2233_v8  ;;  %vm2276_vm12 = vweird.f32 %v3039_v5  ;;  %v2896_v62 = vld [vmem:[%s4087_s15 + $0x28] sm:$0xff] }
 0xab5   : > { %v2256_v12 = vmul.f32 %v3041_v7, %v2221_v63  ;;  %v2239_v14 = vmul.f32 %v3029_v40, %v2238_v11  ;;  %vm2261_vm13 = vweird.f32 %v3041_v7  ;;  %vm2277_vm0 = vmor %vm2275_vm15, %vm2276_vm12  ;;  %v2895_v63 = vld [vmem:[%s4087_s15 + $0x20] sm:$0xff] }
 0xab6   : > { %v2272_v13 = vsub.f32 1.0, %v2271_v9  ;;  %vm2262_vm4 = vmor %vm2260_vm1, %vm2261_vm13  ;;  %v2994_v9 = vld [vmem:[%s4085_s13 + $0x1] ss:$0 sm:$0xff] }
 0xab7   : > { %v2257_v16 = vsub.f32 1.0, %v2256_v12  ;;  %2880 = vmatmul.msk.f32.vlgmr.msra.gmra.mxu3 %vm1189_vm8, %v2239_v14 }
 0xab8   : > { %v2273_v17 = vmul.f32 %v3039_v5, %v2272_v13  ;;  %2547 = vmatpush.msra.mxu3 %v2898_v61  ;;  %v2995_v13 = vld [vmem:[%s4086_s14 + $0x1] ss:$0 sm:$0xff] }
 0xab9   : > { %v2258_v20 = vmul.f32 %v3041_v7, %v2257_v16  ;;  %v2908_v16 = vld [vmem:[%s4089_s17 + $0x78] sm:$0xff] }
 0xaba   : > { %v2274_v22 = vadd.f32 %v3039_v5, %v2273_v17  ;;  %2589 = vmatpush.msra.mxu0 %v2908_v16  ;;  %v2907_v17 = vld [vmem:[%s4089_s17 + $0x70] sm:$0xff] }
 0xabb   : > { %v2259_v25 = vadd.f32 %v3041_v7, %v2258_v20  ;;  %v2904_v20 = vld [vmem:[%s4089_s17 + $0x58] sm:$0xff] }
 0xabc   : > { %v2278_v26 = vsel %vm2277_vm0, %v3039_v5, %v2274_v22  ;;  %2590 = vmatpush.msra.mxu0 %v2907_v17  ;;  %v2902_v22 = vld [vmem:[%s4089_s17 + $0x48] sm:$0xff] }
 0xabd   : > { %v2283_v28 = vsel %vm2280_vm2, %v2282_v23, %v2278_v26  ;;  %v2263_v29 = vsel %vm2262_vm4, %v3041_v7, %v2259_v25  ;;  %v2901_v23 = vld [vmem:[%s4089_s17 + $0x40] sm:$0xff] }
 0xabe   : > { %v2268_v31 = vsel %vm2265_vm5, %v2267_v27, %v2263_v29  ;;  %v2284_v32 = vmul.f32 %v3906_v44, %v2283_v28  ;;  %2591 = vmatpush.msra.mxu0 %v2906_v18  ;;  %v2996_v25 = vld [vmem:[%s4088_s16 + $0x1] ss:$0 sm:$0xff] }
 0xabf   : > { %v2269_v33 = vmul.f32 %v3908_v45, %v2268_v31 }
 0xac0   : > { %2883 = vmatmul.msk.f32.vlgmr.msra.gmra.mxu2 %vm1189_vm8, %v2284_v32  ;;  %2592 = vmatpush.msra.mxu0 %v2905_v19 }
 0xac1   : > { %2882 = vmatmul.msk.f32.vlgmr.msrb.gmra.mxu1 %vm1189_vm8, %v2269_v33 }
 0xac2   : > { %2593 = vmatpush.msra.mxu0 %v2904_v20 }
 0xac4   : > { %2594 = vmatpush.msra.mxu0 %v2903_v21 }
 0xac6   : > { %2595 = vmatpush.msra.mxu0 %v2902_v22 }
 0xac8   : > { %2596 = vmatpush.msra.mxu0 %v2901_v23 }
 0xb29   : > { %v2328_v38 = vpop.f32.mrf.mxu0 }
 0xb2a   : > { %2889 = vmatmul.msk.f32.vlgmr.msrb.gmra.mxu0 %vm1189_vm8, %v2328_v38  ;;  %v2997_v38 = vld [vmem:[%s4090_s18 + $0x1] ss:$0 sm:$0xff] }
 0xb3a   : > { %v2305_v39 = vpop.f32.mrf.mxu3 }
 0xb3b   : > { %2888 = vmatmul.msk.f32.vlgmr.msrb.gmra.mxu3 %vm1189_vm8, %v2305_v39 }
 0xb3e   : > { %v2351_v40 = vpop.f32.mrf.mxu1 }
 0xb3f   : > { %2890 = vmatmul.msk.f32.vlgmr.msra.gmra.mxu1 %vm1189_vm8, %v2351_v40 }
 0xb43   : > { %v2374_v41 = vpop.f32.mrf.mxu2 }
 0xb44   : > { %2891 = vmatmul.msk.f32.vlgmr.msrb.gmra.mxu2 %vm1189_vm8, %v2374_v41 }
 0xba7   : > { %v2425_v42 = vpop.f32.mrf.mxu0 }
 0xba8   : > { %v2475_v45 = vsel %vm812_vm3, %v2425_v42, 0.0 }
 0xbbc   : > { %v2448_v46 = vpop.f32.mrf.mxu1 }
 0xbbd   : > { %v2477_v48 = vsel %vm812_vm3, %v2448_v46, 0.0 }
 0xbbe   : > { %v2402_v43 = vpop.f32.mrf.mxu3 }
 0xbbf   : > { %v2474_v44 = vsel %vm812_vm3, %v2402_v43, 0.0 }
 0xbc0   : > { %v2476_v47 = vadd.f32 %v2475_v45, %v2474_v44 }
 0xbc2   : > { %v2478_v50 = vadd.f32 %v2477_v48, %v2476_v47  ;;  %v2639_v48 = vld [vmem:[%s4093_s21 + $0x18] sm:$0xff] }
 0xbc3   : > { %2656 = vmatpush.msrb.mxu1 %v2639_v48 }
 0xbc7   : > { %v2471_v49 = vpop.f32.mrf.mxu2 }
 0xbc8   : > { %v2479_v52 = vsel %vm812_vm3, %v2471_v49, 0.0  ;;  %v2638_v49 = vld [vmem:[%s4093_s21 + $0x10] sm:$0xff] }
 0xbc9   : > { %v2480_v53 = vadd.f32 %v2479_v52, %v2478_v50  ;;  %v2637_v50 = vld [vmem:[%s4093_s21 + $0x8] sm:$0xff]  ;;  %2657 = vmatpush.msrb.mxu1 %v2638_v49 }
 0xbcb   : > { %v2486_v54 = vadd.f32 %v2993_v51, %v2480_v53  ;;  %v2636_v51 = vld [vmem:[%s4093_s21] sm:$0xff]  ;;  %2658 = vmatpush.msrb.mxu1 %v2637_v50 }
 0xbcd   : > { %v2487_v55 = vadd.f32 %v2486_v54, %v3782_v24  ;;  %v2897_v24 = vld [vmem:[%s4087_s15 + $0x30] sm:$0xff]  ;;  %2659 = vmatpush.msrb.mxu1 %v2636_v51 }
 0xbce   : > { %2548 = vmatpush.msra.mxu3 %v2897_v24 }
 0xbcf   : > { %v2492_v56 = vsel %vm812_vm3, %v2487_v55, 0.0 }
 0xbd0   : > { %2493 = vadd.xlane.f32.xlu1 %v2492_v56  ;;  %2549 = vmatpush.msra.mxu3 %v2896_v62 }
 0xbd2   : > { %2550 = vmatpush.msra.mxu3 %v2895_v63 }
 0xc43   : > { %v2494_v10 = vpop.xlane.xlu1 %2493 }
 0xc44   : > { %v2495_v57 = vmul.f32 %v2494_v10, %v3343_v30 }
 0xc46   : > { %v2496_v58 = vsub.f32 %v2487_v55, %v2495_v57 }
 0xc48   : > { %v2497_v59 = vmul.f32 %v2496_v58, %v2496_v58 }
 0xc4a   : > { %v2498_v60 = vsel %vm812_vm3, %v2497_v59, 0.0 }
 0xc4b   : > { %2499 = vadd.xlane.f32.xlu2 %v2498_v60  ;;  %v2998_v60 = vld [vmem:[%s4091_s19 + $0x1] ss:$0 sm:$0xff] }
 0xcbe   : > { %v2500_v0 = vpop.xlane.xlu2 %2499 }
 0xcbf   : > { %v2501_v1 = vmul.f32 %v2500_v0, %v3343_v30  ;;  %v2668_v0 = vld [vmem:[%s4095_s23 + $0x18] sm:$0xff] }
 0xcc0   : > { %2685 = vmatpush.msra.mxu2 %v2668_v0 }
 0xcc1   : > { %v2502_v2 = vadd.f32 1e-12, %v2501_v1  ;;  %v2667_v1 = vld [vmem:[%s4095_s23 + $0x10] sm:$0xff] }
 0xcc2   : > { %2686 = vmatpush.msra.mxu2 %v2667_v1 }
 0xcc3   : > { %3042 = vrsqrt.f32 %v2502_v2  ;;  %vm2509_vm6 = vweird.f32 %v2502_v2 }
 0xcc9   : > { %v3043_v3 = vpop.eup %3042 }
 0xcca   : > { %v2504_v4 = vmul.f32 %v3043_v3, %v2502_v2  ;;  %vm2510_vm8 = vweird.f32 %v3043_v3  ;;  %v2666_v2 = vld [vmem:[%s4095_s23 + $0x8] sm:$0xff] }
 0xccb   : > { %vm2511_vm7 = vmor %vm2509_vm6, %vm2510_vm8  ;;  %2687 = vmatpush.msra.mxu2 %v2666_v2 }
 0xccc   : > { %v2505_v5 = vmul.f32 %v3043_v3, %v2504_v4  ;;  %v2640_v4 = vld [vmem:[%s4155_s29] sm:$0x1]  ;;  %s3064_s29 = sshra.s32 %s2708_s6, 4  ;;  %s3065_s29 = int_to_ptr.hbm [resolvable:$true] %s3064_s29 }
 0xccd   : > { %s3066_s12 = scalar_lea.hbm %s3065_s29, 1  ;;  %p3071_p0 = scmp.lt.s32.totalorder %s3065_s29, %s4156_s4 }
 0xcce   : > { %v2506_v6 = vmul.f32 0.5, %v2505_v5  ;;  %p3067_p11 = scmp.ne.s32.totalorder %s3065_s29, %s3066_s12 }
 0xcd0   : > { %v2507_v7 = vsub.f32 1.5, %v2506_v6  ;;  %p3068_p12 = pnand %p3067_p11, %p3285_p5 }
 0xcd2   : > { %v2508_v8 = vmul.f32 %v3043_v3, %v2507_v7  ;;  %p3069_p13 = pneg %p3068_p12 }
 0xcd4   : > { %v2512_v11 = vsel %vm2511_vm7, %v3043_v3, %v2508_v8  ;;  %v2665_v3 = vld [vmem:[%s4095_s23] sm:$0xff] }
 0xcd5   : > { %v2513_v12 = vmul.f32 %v2512_v11, %v2496_v58  ;;  %2688 = vmatpush.msra.mxu2 %v2665_v3  ;;  %v2669_v8 = vld [vmem:[%s4158_s1] sm:$0x1]  ;;  %s3070_s1 = scalar_lea.hbm %s4156_s4, 2 }
 0xcd6   : > { %p3072_p1 = scmp.lt.s32.totalorder %s3070_s1, %s3066_s12 }
 0xcd7   : > { %v2517_v14 = vmul.f32 %v2994_v9, %v2513_v12 }
 0xcd8   : > { %p3073_p2 = por %p3072_p1, %p3071_p0 }
 0xcd9   : > { %v2521_v15 = vadd.f32 %v2995_v13, %v2517_v14 }
 0xcda   : > { %p3074_p3 = pnand %p3073_p2, %p3069_p13 }
 0xcdb   : > { %2900 = vmatmul.msk.f32.vlgmr.msra.gmra.mxu3 %vm812_vm3, %v2521_v15 }
 0xd5e   : > { %v2552_v26 = vpop.f32.mrf.mxu3 }
 0xd5f   : > { %v2553_v27 = vadd.f32 %v2996_v25, %v2552_v26 }
 0xd61   : > { %v2555_v28 = vmul.f32 %v2553_v27, %v2553_v27 }
 0xd63   : > { %v2556_v29 = vmul.f32 %v2555_v28, %v2553_v27 }
 0xd65   : > { %v2557_v31 = vmul.f32 0.044715, %v2556_v29 }
 0xd67   : > { %v2558_v32 = vadd.f32 %v2557_v31, %v2553_v27 }
 0xd69   : > { %v2559_v33 = vmul.f32 0.7978846, %v2558_v32 }
 0xd6b   : > { %3044 = vtanh.f32 %v2559_v33 }
 0xd71   : > { %v3045_v34 = vpop.eup %3044 }
 0xd72   : > { %v2561_v35 = vadd.f32 1.0, %v3045_v34 }
 0xd74   : > { %v2562_v36 = vmul.f32 0.5, %v2561_v35 }
 0xd76   : > { %v2563_v37 = vmul.f32 %v2562_v36, %v2553_v27 }
 0xd78   : > { %2910 = vmatmul.msk.f32.vlgmr.msra.gmra.mxu0 %vm1679_vm14, %v2563_v37 }
 0xdf5   : > { %v2598_v39 = vpop.f32.mrf.mxu0 }
 0xdf6   : > { %v2599_v40 = vadd.f32 %v2997_v38, %v2598_v39 }
 0xdf8   : > { %v2601_v41 = vadd.f32 %v2599_v40, %v2521_v15 }
 0xdfa   : > { %v2606_v42 = vsel %vm812_vm3, %v2601_v41, 0.0 }
 0xdfb   : > { %2607 = vadd.xlane.f32.xlu0 %v2606_v42 }
 0xe6e   : > { %v2608_v43 = vpop.xlane.xlu0 %2607 }
 0xe6f   : > { %v2609_v44 = vmul.f32 %v2608_v43, %v3343_v30 }
 0xe71   : > { %v2610_v45 = vsub.f32 %v2601_v41, %v2609_v44 }
 0xe73   : > { %v2611_v46 = vmul.f32 %v2610_v45, %v2610_v45 }
 0xe75   : > { %v2612_v47 = vsel %vm812_vm3, %v2611_v46, 0.0 }
 0xe76   : > { %2613 = vadd.xlane.f32.xlu1 %v2612_v47 }
 0xee9   : > { %v2614_v52 = vpop.xlane.xlu1 %2613 }
 0xeea   : > { %v2615_v53 = vmul.f32 %v2614_v52, %v3343_v30  ;;  %v2999_v30 = vld [vmem:[%s4092_s20 + $0x1] ss:$0 sm:$0xff] }
 0xeec   : > { %v2616_v54 = vadd.f32 1e-12, %v2615_v53 }
 0xeee   : > { %3046 = vrsqrt.f32 %v2616_v54  ;;  %vm2623_vm9 = vweird.f32 %v2616_v54 }
 0xef4   : > { %v3047_v55 = vpop.eup %3046 }
 0xef5   : > { %v2618_v56 = vmul.f32 %v3047_v55, %v2616_v54  ;;  %vm2624_vm14 = vweird.f32 %v3047_v55 }
 0xef6   : > { %vm2625_vm10 = vmor %vm2623_vm9, %vm2624_vm14 }
 0xef7   : > { %v2619_v10 = vmul.f32 %v3047_v55, %v2618_v56 }
 0xef9   : > { %v2620_v57 = vmul.f32 0.5, %v2619_v10 }
 0xefb   : > { %v2621_v58 = vsub.f32 1.5, %v2620_v57 }
 0xefd   : > { %v2622_v59 = vmul.f32 %v3047_v55, %v2621_v58 }
 0xeff   : > { %v2626_v61 = vsel %vm2625_vm10, %v3047_v55, %v2622_v59 }
 0xf00   : > { %v2627_v24 = vmul.f32 %v2626_v61, %v2610_v45 }
 0xf02   : > { %v2631_v62 = vmul.f32 %v2998_v60, %v2627_v24 }
 0xf04   : > { %v2635_v63 = vadd.f32 %v2999_v30, %v2631_v62 }
 0xf06   : > { %2913 = vmatmul.msk.f32.vlgmr.msrb.gmra.mxu1 %vm812_vm3, %v2635_v63 }
 0xf83   : > { %v2661_v5 = vpop.f32.mrf.mxu1 }
 0xf84   : > { %v2662_v6 = vadd.f32 %v2661_v5, %v2640_v4 }
 0xf86   : > { %3048 = vtanh.f32 %v2662_v6 }
 0xf8c   : > { %v3049_v7 = vpop.eup %3048 }
 0xf8d   : > { %2914 = vmatmul.msk.f32.vlgmr.msra.gmra.mxu2 %vm812_vm3, %v3049_v7 }
0x1010   : > { %v2690_v9 = vpop.f32.mrf.mxu2 }
0x1011   : > { %v2691_v11 = vadd.f32 %v2690_v9, %v2669_v8 }
0x1013   : > { %2693 = vst [vmem:[%s754_s10] sm:$0x1] %v2691_v11 }
0x1014   : > { %3077 = shalt.err (!%p3074_p3)
}
0x1015   : > { %2917 = dma.vmem_to_hbm [thread:$0]  (%p3285_p5), %s2706_s11, 16, %s2708_s6, %s2695_s26  }
0x1016 PF: > { %s4159_s10 = sld [smem:[#allocation7_spill]] }
0x1017   : > { %s4160_s22 = sld [smem:[#allocation5_spill]] }
0x101c   : > { %p2923_p4 = scmp.ge.s32.totalorder %s4159_s10, 2 }
0x101d   : > { %s2719_s3 = sand.u32 1, %s4160_s22  }
0x101e   : > { %p2920_p7 = pnand %p2923_p4, %p3289_p6  ;;  %s2720_s7 = scalar_lea.sflag [#allocation3], %s2719_s3 }
0x1020   : > { %p2921_p8 = pneg %p2920_p7 }
0x1022   : > { %3095 = dma.done.wait (%p2921_p8), %s2720_s7, 16  }
0x1023   : > { %3097 = vsyncadd (%p2921_p8), %s2720_s7, 4294967280  ;;  %s4162_s30 = sld [smem:[#allocation8_spill]]  ;;  %s4165_s29 = smov %s3104_s2 }
0x1024   : > { %s4163_s12 = sld [smem:[#allocation6_spill]] }
0x1025   : > { %s4164_s6 = sld [smem:[#allocation9_spill]] }
0x1029   : > { %p35_p9 = scmp.ge.s32.totalorder %s4162_s30, 4  }
0x102a   : > { %s4166_s2 = smov %s4163_s12 }
0x102b   :  { %37 = sbr.rel (!%p35_p9) target bundleno = 20 (0x14), region = 171 }
0x1030   :  { %2725 = vsyncpa [#allocation3], 1 }
0x1031   :  { %2727 = vsyncpa [#allocation3 + $0x1], 1 }

</bundles_post_ra>
